<compile_context>
chip_gen: v6e
topology: v6e:2x2x1
jax: 0.10.0
libtpu: 0.0.40
codegen_flags: <defaults>
</compile_context>

<pallas_src>
import functools

import jax
import jax.numpy as jnp
from jax.experimental import pallas as pl
from jax.experimental.pallas import tpu as pltpu

EPS = 1e-5
_LANE = 128


def _round_up(x, m):
    return (x + m - 1) // m * m


def _pad2d(a, rows, cols):
    return jnp.pad(a, ((0, rows - a.shape[0]), (0, cols - a.shape[1])))


def _vmem_budget_bytes():
    """~75% of physical VMEM (96 MiB on v5e/v6e, 48 MiB on v7x); 48 MiB fallback."""
    try:
        cap = int(pltpu.get_tpu_info().vmem_capacity_bytes)
    except Exception:
        cap = 64 * 1024 * 1024
    return max(32 * 1024 * 1024, (cap // 4) * 3)


_VMEM_BUDGET = _vmem_budget_bytes()


def _divisor_tiles(dim, cap):
    cap = max(_LANE, min(cap, dim))
    return [t for t in range(_LANE, cap + 1, _LANE) if dim % t == 0]


def _choose_f_tile(fp):
    cap = fp // 2 if fp >= 2 * _LANE else fp     # >=2 output blocks when possible (v7x)
    return max(_divisor_tiles(fp, min(512, cap)))


def _choose_snd_tile(sp, bp, budget):
    """Tile for the 6F dimension (used as both tk and tn), sized to the VMEM budget."""
    cap = sp // 2 if sp >= 2 * _LANE else sp     # >=2 output blocks -> both v7x cores busy

    def need(t):
        return (2 * bp * sp * 2      # VMEM-resident bf16 activations (double-buffered)
                + 2 * t * t * 2      # streamed bf16 weight tiles
                + bp * t * 4         # f32 accumulator scratch
                + 2 * bp * t * 2     # bf16 output tiles
                + 2 * bp * t * 2     # bf16 residual tiles
                + 6 * t * 4          # gamma / beta / bias tiles
                + (1 << 20))         # slack (alpha, semaphores, alignment)

    cands = _divisor_tiles(sp, min(1024, cap))
    fitting = [t for t in cands if need(t) <= budget]
    if fitting:
        return max(fitting)
    # TODO(synk): batch-tile (with a separate BN-stats pass / carried partial sums) when
    # even the smallest tile does not fit the VMEM budget (huge batches on v7x).
    return cands[0] if cands else _LANE


def _to_tiles(a, tile):
    """(Bp, D) -> (D//tile, Bp, tile); tile k holds columns [k*tile, (k+1)*tile)."""
    r, c = a.shape
    return a.reshape(r, c // tile, tile).transpose(1, 0, 2)


# ---------------------------------------------------------------------------
# One stage:  BatchNorm1d (batch stats) [-> PReLU] -> Linear [-> (.+res)*0.5]
# ---------------------------------------------------------------------------
def _bn_linear_kernel(n_ref, u_ref, g_ref, be_ref, *rest,
                      has_prelu, has_residual, res_scale):
    rest = list(rest)
    a_ref = rest.pop(0) if has_prelu else None
    w_ref = rest.pop(0)
    b_ref = rest.pop(0)
    res_ref = rest.pop(0) if has_residual else None
    o_ref, acc_ref = rest

    k = pl.program_id(1)

    @pl.when(k == 0)
    def _():
        acc_ref[...] = jnp.zeros_like(acc_ref)

    # Current K tile of the VMEM-resident activations (leading-dim dynamic index).
    u = u_ref[k].astype(jnp.float32)                       # (Bp, tk)

    # --- row-masked, centered (two-pass) BatchNorm statistics (training mode) ---
    nrows = n_ref[0]
    inv_b = 1.0 / nrows.astype(jnp.float32)
    row = jax.lax.broadcasted_iota(jnp.int32, (u.shape[0], 1), 0)
    rmask = row < nrows                                    # real rows only

    mean = jnp.sum(jnp.where(rmask, u, 0.0), axis=0, keepdims=True) * inv_b
    d = jnp.where(rmask, u - mean, 0.0)                    # centered & pad rows zeroed
    var = jnp.sum(d * d, axis=0, keepdims=True) * inv_b    # biased, no cancellation
    scale = g_ref[...] * jax.lax.rsqrt(var + EPS)          # rsqrt -> EUP slot
    h = d * scale + be_ref[...]                            # fused affine (pad rows -> beta)

    if has_prelu:
        h = jnp.where(h >= 0.0, h, h * a_ref[...])         # shared scalar slope

    # --- MXU matmul: bf16 inputs, f32 accumulation -------------------------------
    acc_ref[...] += jnp.dot(h.astype(jnp.bfloat16), w_ref[...],
                            preferred_element_type=jnp.float32)

    # --- epilogue on the last K tile ---------------------------------------------
    @pl.when(k == pl.num_programs(1) - 1)
    def _():
        r = acc_ref[...] + b_ref[...]
        if has_residual:
            r = (r + res_ref[...].astype(jnp.float32)) * res_scale
        o_ref[...] = r.astype(o_ref.dtype)


def _bn_linear_stage(nrows, u3, gamma, beta, alpha, w_bf16, bias, residual=None, *,
                     has_prelu, res_scale=0.5, tile_n, out_3d, out_dtype, vmem_limit):
    nk, Bp, tk = u3.shape
    K = nk * tk
    Kw, N = w_bf16.shape
    assert Kw == K and N % tile_n == 0
    tn = tile_n
    nn = N // tn

    # index_maps receive the scalar-prefetch ref (real batch size) as a trailing arg.
    in_specs = [
        pl.BlockSpec((nk, Bp, tk), lambda j, k, n: (0, 0, 0)),   # resident activations: 1 DMA
        pl.BlockSpec((1, tk), lambda j, k, n: (0, k)),           # BN gamma
        pl.BlockSpec((1, tk), lambda j, k, n: (0, k)),           # BN beta
    ]
    args = [u3, gamma, beta]
    if has_prelu:
        in_specs.append(pl.BlockSpec((1, 1), lambda j, k, n: (0, 0)))   # PReLU slope
        args.append(alpha)
    in_specs.append(pl.BlockSpec((tk, tn), lambda j, k, n: (k, j)))     # streamed weight tile
    args.append(w_bf16)
    in_specs.append(pl.BlockSpec((1, tn), lambda j, k, n: (0, j)))      # bias
    args.append(bias)
    if residual is not None:
        in_specs.append(pl.BlockSpec((None, Bp, tn), lambda j, k, n: (j, 0, 0)))
        args.append(residual)

    if out_3d:   # feed the next stage directly in its (nK, Bp, tK) resident layout
        out_shape = jax.ShapeDtypeStruct((nn, Bp, tn), out_dtype)
        out_spec = pl.BlockSpec((None, Bp, tn), lambda j, k, n: (j, 0, 0))
    else:
        out_shape = jax.ShapeDtypeStruct((Bp, N), out_dtype)
        out_spec = pl.BlockSpec((Bp, tn), lambda j, k, n: (0, j))

    kernel = functools.partial(_bn_linear_kernel, has_prelu=has_prelu,
                               has_residual=residual is not None, res_scale=res_scale)

    out_bytes = jnp.dtype(out_dtype).itemsize
    bytes_accessed = (u3.size * 2 + w_bf16.size * 2 + bias.size * 4
                      + gamma.size * 4 + beta.size * 4 + Bp * N * out_bytes
                      + (residual.size * 2 if residual is not None else 0))
    cost = pl.CostEstimate(flops=2 * Bp * K * N, transcendentals=nn * K,
                           bytes_accessed=int(bytes_accessed))

    return pl.pallas_call(
        kernel,
        out_shape=out_shape,
        grid_spec=pltpu.PrefetchScalarGridSpec(
            num_scalar_prefetch=1,
            grid=(nn, nk),                                   # reduction axis last
            in_specs=in_specs,
            out_specs=out_spec,
            scratch_shapes=[pltpu.VMEM((Bp, tn), jnp.float32)],
        ),
        compiler_params=pltpu.CompilerParams(
            dimension_semantics=("parallel", "arbitrary"),
            vmem_limit_bytes=int(vmem_limit),
        ),
        cost_estimate=cost,
    )(nrows, *args)


# ---------------------------------------------------------------------------
# Parameters (PyTorch-equivalent shapes; Linear weights stored as W.T = (in,out))
# ---------------------------------------------------------------------------
def init_params(key, n_feats):
    snd = 6 * n_feats

    def lin_params(k, fin, fout):
        k1, k2 = jax.random.split(k)
        bound = 1.0 / float(fin) ** 0.5
        w = jax.random.uniform(k1, (fin, fout), jnp.float32, -bound, bound)
        b = jax.random.uniform(k2, (1, fout), jnp.float32, -bound, bound)
        return w, b

    keys = jax.random.split(key, 5)
    params = []

    # lin1: BN(F), Linear(F -> 6F)
    w, b = lin_params(keys[0], n_feats, snd)
    params += [jnp.ones((1, n_feats), jnp.float32),
               jnp.zeros((1, n_feats), jnp.float32), w, b]

    # lin2, lin3, lin4: BN(6F), PReLU, Linear(6F -> 6F)
    for i in range(3):
        w, b = lin_params(keys[1 + i], snd, snd)
        params += [jnp.ones((1, snd), jnp.float32),
                   jnp.zeros((1, snd), jnp.float32),
                   jnp.full((1, 1), 0.25, jnp.float32), w, b]

    # lin5: BN(6F), PReLU, Linear(6F -> F)
    w, b = lin_params(keys[4], snd, n_feats)
    params += [jnp.ones((1, snd), jnp.float32),
               jnp.zeros((1, snd), jnp.float32),
               jnp.full((1, 1), 0.25, jnp.float32), w, b]
    return params


@jax.jit
def linear_block(x, params):
    (g1, be1, w1, b1,
     g2, be2, a2, w2, b2,
     g3, be3, a3, w3, b3,
     g4, be4, a4, w4, b4,
     g5, be5, a5, w5, b5) = params

    B, F = x.shape
    SND = 6 * F
    Bp = _round_up(B, 16)          # bf16 sublane packing minimum, not 128
    Fp = _round_up(F, _LANE)       # lane-dense narrow edges
    Sp = _round_up(SND, _LANE)

    budget = _VMEM_BUDGET
    Tf = _choose_f_tile(Fp)                      # tile for the F-wide axes
    Ts = _choose_snd_tile(Sp, Bp, budget)        # tile for the 6F-wide axes

    nrows = jnp.array([B], jnp.int32)            # scalar-prefetch: real batch size

    # padded / bf16 / tiled operands
    xp = _pad2d(x.astype(jnp.float32), Bp, Fp).astype(jnp.bfloat16)
    x3 = _to_tiles(xp, Tf)                       # (Fp//Tf, Bp, Tf)

    def pad_w(w, r, c):
        return _pad2d(w, r, c).astype(jnp.bfloat16)

    g1p, be1p, b1p = _pad2d(g1, 1, Fp), _pad2d(be1, 1, Fp), _pad2d(b1, 1, Sp)
    g2p, be2p, b2p = _pad2d(g2, 1, Sp), _pad2d(be2, 1, Sp), _pad2d(b2, 1, Sp)
    g3p, be3p, b3p = _pad2d(g3, 1, Sp), _pad2d(be3, 1, Sp), _pad2d(b3, 1, Sp)
    g4p, be4p, b4p = _pad2d(g4, 1, Sp), _pad2d(be4, 1, Sp), _pad2d(b4, 1, Sp)
    g5p, be5p, b5p = _pad2d(g5, 1, Sp), _pad2d(be5, 1, Sp), _pad2d(b5, 1, Fp)
    w1p, w2p, w3p = pad_w(w1, Fp, Sp), pad_w(w2, Sp, Sp), pad_w(w3, Sp, Sp)
    w4p, w5p = pad_w(w4, Sp, Sp), pad_w(w5, Sp, Fp)

    common = dict(tile_n=Ts, out_3d=True, out_dtype=jnp.bfloat16, vmem_limit=budget)

    # lin1: BN -> Linear
    h1 = _bn_linear_stage(nrows, x3, g1p, be1p, None, w1p, b1p,
                          has_prelu=False, **common)
    # x = (lin3(lin2(x)) + x) / 2
    t2 = _bn_linear_stage(nrows, h1, g2p, be2p, a2, w2p, b2p,
                          has_prelu=True, **common)
    h3 = _bn_linear_stage(nrows, t2, g3p, be3p, a3, w3p, b3p, residual=h1,
                          has_prelu=True, res_scale=0.5, **common)
    # x = (lin4(x) + x) / 2
    h4 = _bn_linear_stage(nrows, h3, g4p, be4p, a4, w4p, b4p, residual=h3,
                          has_prelu=True, res_scale=0.5, **common)
    # lin5: BN -> PReLU -> Linear  (final output in f32, 2-D)
    out = _bn_linear_stage(nrows, h4, g5p, be5p, a5, w5p, b5p,
                           has_prelu=True, tile_n=Tf, out_3d=False,
                           out_dtype=jnp.float32, vmem_limit=budget)
    return out[:B, :F]


# ---------------------------------------------------------------------------
# Pure-JAX f32 reference mirroring the PyTorch forward (for verification)
# ---------------------------------------------------------------------------
def _bn_ref(x, gamma, beta):
    mean = jnp.mean(x, axis=0, keepdims=True)
    var = jnp.mean((x - mean) ** 2, axis=0, keepdims=True)
    return (x - mean) * (gamma * jax.lax.rsqrt(var + EPS)) + beta


def _prelu_ref(x, a):
    return jnp.where(x >= 0, x, a * x)


def linear_block_ref(x, params):
    (g1, be1, w1, b1,
     g2, be2, a2, w2, b2,
     g3, be3, a3, w3, b3,
     g4, be4, a4, w4, b4,
     g5, be5, a5, w5, b5) = params

    def lin(u, w, b):
        return u @ w + b

    h = lin(_bn_ref(x, g1, be1), w1, b1)
    t = lin(_prelu_ref(_bn_ref(h, g2, be2), a2), w2, b2)
    t = lin(_prelu_ref(_bn_ref(t, g3, be3), a3), w3, b3)
    h = (t + h) * 0.5
    t = lin(_prelu_ref(_bn_ref(h, g4, be4), a4), w4, b4)
    h = (t + h) * 0.5
    return lin(_prelu_ref(_bn_ref(h, g5, be5), a5), w5, b5)


if __name__ == "__main__":
    key = jax.random.PRNGKey(0)
    k_x, k_p = jax.random.split(key)

    n_feats = 32
    batch = 8
    x = jax.random.normal(k_x, (batch, n_feats), jnp.float32)
    params = init_params(k_p, n_feats)

    out = jax.block_until_ready(linear_block(x, params))

    ref = linear_block_ref(x, params)
    assert out.shape == (batch, n_feats)
    # bf16 weights + bf16 inter-stage activations (f32 BN stats / accumulation)
    # => looser tolerance vs the f32 reference.
    err = float(jnp.max(jnp.abs(out - ref)))
    assert err < 6e-2, f"mismatch vs JAX reference: max abs err {err}"

    print("KERNEL_OK")
</pallas_src>

<mosaic_0001>
module attributes {stable_mosaic.version = 11 : i64} {
  func.func @_bn_linear_kernel(%arg0: i32, %arg1: i32, %arg2: memref<1xi32, #tpu.memory_space<smem>>, %arg3: memref<2x16x128xbf16, #tpu.memory_space<vmem>>, %arg4: memref<1x128xf32, #tpu.memory_space<vmem>>, %arg5: memref<1x128xf32, #tpu.memory_space<vmem>>, %arg6: memref<1x1xf32, #tpu.memory_space<vmem>>, %arg7: memref<128x128xbf16, #tpu.memory_space<vmem>>, %arg8: memref<1x128xf32, #tpu.memory_space<vmem>>, %arg9: memref<1x16x128xbf16, #tpu.memory_space<vmem>>, %arg10: memref<1x16x128xbf16, #tpu.memory_space<vmem>>, %arg11: memref<16x128xf32, #tpu.memory_space<vmem>>) attributes {dimension_semantics = [#tpu.dimension_semantics<parallel>, #tpu.dimension_semantics<arbitrary>], iteration_bounds = array<i64: 2, 2>, scalar_prefetch = 1 : i64, scratch_operands = 1 : i64, tpu.core_type = #tpu.core_type<tc>, window_params = [{pipeline_mode = #tpu.pipeline_mode<synchronous>, transform_indices = @transform_0, window_bounds = array<i64: 2, 16, 128>}, {transform_indices = @transform_1, window_bounds = array<i64: 1, 128>}, {transform_indices = @transform_2, window_bounds = array<i64: 1, 128>}, {pipeline_mode = #tpu.pipeline_mode<synchronous>, transform_indices = @transform_3, window_bounds = array<i64: 1, 1>}, {transform_indices = @transform_4, window_bounds = array<i64: 128, 128>}, {transform_indices = @transform_5, window_bounds = array<i64: 1, 128>}, {transform_indices = @transform_6, window_bounds = array<i64: 1, 16, 128>}, {transform_indices = @transform_7, window_bounds = array<i64: 1, 16, 128>}]} {
    %c0_i32 = arith.constant 0 : i32
    %0 = arith.cmpi eq, %arg1, %c0_i32 : i32
    %1 = arith.extui %0 : i1 to i32
    %c0_i32_0 = arith.constant 0 : i32
    %2 = arith.cmpi ne, %1, %c0_i32_0 : i32
    scf.if %2 {
      %cst_23 = arith.constant 0.000000e+00 : f32
      %57 = vector.broadcast %cst_23 : f32 to vector<16x128xf32>
      %c0_24 = arith.constant 0 : index
      %c0_25 = arith.constant 0 : index
      %58 = vector.load %arg11[%c0_24, %c0_25] : memref<16x128xf32, #tpu.memory_space<vmem>>, vector<16x128xf32>
      tpu.vector_store %arg11[%c0_24, %c0_25], %57 {strides = array<i32>} : memref<16x128xf32, #tpu.memory_space<vmem>>, vector<16x128xf32>,
    } else {
    }
    %3 = arith.index_cast %arg1 : i32 to index
    %c0 = arith.constant 0 : index
    %c0_1 = arith.constant 0 : index
    %4 = vector.load %arg3[%3, %c0, %c0_1] : memref<2x16x128xbf16, #tpu.memory_space<vmem>>, vector<1x16x128xbf16>
    %5 = vector.shape_cast %4 : vector<1x16x128xbf16> to vector<16x128xbf16>
    %6 = arith.extf %5 : vector<16x128xbf16> to vector<16x128xf32>
    %c0_2 = arith.constant 0 : index
    %7 = memref.load %arg2[%c0_2] : memref<1xi32, #tpu.memory_space<smem>>
    %8 = arith.sitofp %7 : i32 to f32
    %cst = arith.constant 1.000000e+00 : f32
    %9 = arith.divf %cst, %8 : f32
    %10 = tpu.iota {dimensions = array<i32: 0>} : vector<16x1xi32>
    %11 = vector.broadcast %7 : i32 to vector<16x1xi32>
    %12 = arith.cmpi slt, %10, %11 : vector<16x1xi32>
    %cst_3 = arith.constant 0.000000e+00 : f32
    %13 = vector.shape_cast %12 : vector<16x1xi1> to vector<16x1xi1>
    %14 = vector.broadcast %13 : vector<16x1xi1> to vector<16x128xi1>
    %15 = vector.broadcast %cst_3 : f32 to vector<16x128xf32>
    %16 = arith.select %14, %6, %15 : vector<16x128xi1>, vector<16x128xf32>
    %cst_4 = arith.constant dense<0.000000e+00> : vector<128xf32>
    %17 = vector.multi_reduction <add>, %16, %cst_4 [0] : vector<16x128xf32> to vector<128xf32>
    %18 = vector.shape_cast %17 : vector<128xf32> to vector<1x128xf32>
    %19 = vector.broadcast %9 : f32 to vector<1x128xf32>
    %20 = arith.mulf %18, %19 : vector<1x128xf32>
    %21 = vector.broadcast %20 : vector<1x128xf32> to vector<16x128xf32>
    %22 = arith.subf %6, %21 : vector<16x128xf32>
    %cst_5 = arith.constant 0.000000e+00 : f32
    %23 = vector.shape_cast %12 : vector<16x1xi1> to vector<16x1xi1>
    %24 = vector.broadcast %23 : vector<16x1xi1> to vector<16x128xi1>
    %25 = vector.broadcast %cst_5 : f32 to vector<16x128xf32>
    %26 = arith.select %24, %22, %25 : vector<16x128xi1>, vector<16x128xf32>
    %27 = arith.mulf %26, %26 : vector<16x128xf32>
    %cst_6 = arith.constant dense<0.000000e+00> : vector<128xf32>
    %28 = vector.multi_reduction <add>, %27, %cst_6 [0] : vector<16x128xf32> to vector<128xf32>
    %29 = vector.shape_cast %28 : vector<128xf32> to vector<1x128xf32>
    %30 = vector.broadcast %9 : f32 to vector<1x128xf32>
    %31 = arith.mulf %29, %30 : vector<1x128xf32>
    %c0_7 = arith.constant 0 : index
    %c0_8 = arith.constant 0 : index
    %32 = vector.load %arg4[%c0_7, %c0_8] : memref<1x128xf32, #tpu.memory_space<vmem>>, vector<1x128xf32>
    %cst_9 = arith.constant 9.99999974E-6 : f32
    %33 = vector.broadcast %cst_9 : f32 to vector<1x128xf32>
    %34 = arith.addf %31, %33 : vector<1x128xf32>
    %35 = math.rsqrt %34 : vector<1x128xf32>
    %36 = arith.mulf %32, %35 : vector<1x128xf32>
    %37 = vector.broadcast %36 : vector<1x128xf32> to vector<16x128xf32>
    %38 = arith.mulf %26, %37 : vector<16x128xf32>
    %c0_10 = arith.constant 0 : index
    %c0_11 = arith.constant 0 : index
    %39 = vector.load %arg5[%c0_10, %c0_11] : memref<1x128xf32, #tpu.memory_space<vmem>>, vector<1x128xf32>
    %40 = vector.broadcast %39 : vector<1x128xf32> to vector<16x128xf32>
    %41 = arith.addf %38, %40 : vector<16x128xf32>
    %cst_12 = arith.constant 0.000000e+00 : f32
    %42 = vector.broadcast %cst_12 : f32 to vector<16x128xf32>
    %43 = arith.cmpf oge, %41, %42 : vector<16x128xf32>
    %c0_13 = arith.constant 0 : index
    %c0_14 = arith.constant 0 : index
    %44 = vector.load %arg6[%c0_13, %c0_14] : memref<1x1xf32, #tpu.memory_space<vmem>>, vector<1x1xf32>
    %45 = vector.broadcast %44 : vector<1x1xf32> to vector<16x128xf32>
    %46 = arith.mulf %41, %45 : vector<16x128xf32>
    %47 = arith.select %43, %41, %46 : vector<16x128xi1>, vector<16x128xf32>
    %c0_15 = arith.constant 0 : index
    %c0_16 = arith.constant 0 : index
    %48 = vector.load %arg11[%c0_15, %c0_16] : memref<16x128xf32, #tpu.memory_space<vmem>>, vector<16x128xf32>
    %49 = arith.truncf %47 : vector<16x128xf32> to vector<16x128xbf16>
    %c0_17 = arith.constant 0 : index
    %c0_18 = arith.constant 0 : index
    %50 = vector.load %arg7[%c0_17, %c0_18] : memref<128x128xbf16, #tpu.memory_space<vmem>>, vector<128x128xbf16>
    %cst_19 = arith.constant dense<0.000000e+00> : vector<16x128xf32>
    %51 = tpu.matmul %49, %50, %cst_19 {dimension_numbers = #tpu.dot_dimension_numbers<[1], [0], [0], [1], [0, 0, 1, 1], [], []>} : vector<16x128xbf16>, vector<128x128xbf16>, vector<16x128xf32> -> vector<16x128xf32>
    %52 = arith.addf %48, %51 : vector<16x128xf32>
    %c0_20 = arith.constant 0 : index
    %c0_21 = arith.constant 0 : index
    %53 = vector.load %arg11[%c0_20, %c0_21] : memref<16x128xf32, #tpu.memory_space<vmem>>, vector<16x128xf32>
    tpu.vector_store %arg11[%c0_20, %c0_21], %52 {strides = array<i32>} : memref<16x128xf32, #tpu.memory_space<vmem>>, vector<16x128xf32>,
    %c1_i32 = arith.constant 1 : i32
    %54 = arith.cmpi eq, %arg1, %c1_i32 : i32
    %55 = arith.extui %54 : i1 to i32
    %c0_i32_22 = arith.constant 0 : i32
    %56 = arith.cmpi ne, %55, %c0_i32_22 : i32
    scf.if %56 {
      %c0_23 = arith.constant 0 : index
      %c0_24 = arith.constant 0 : index
      %57 = vector.load %arg11[%c0_23, %c0_24] : memref<16x128xf32, #tpu.memory_space<vmem>>, vector<16x128xf32>
      %c0_25 = arith.constant 0 : index
      %c0_26 = arith.constant 0 : index
      %58 = vector.load %arg8[%c0_25, %c0_26] : memref<1x128xf32, #tpu.memory_space<vmem>>, vector<1x128xf32>
      %59 = vector.broadcast %58 : vector<1x128xf32> to vector<16x128xf32>
      %60 = arith.addf %57, %59 : vector<16x128xf32>
      %c0_27 = arith.constant 0 : index
      %c0_28 = arith.constant 0 : index
      %c0_29 = arith.constant 0 : index
      %61 = vector.load %arg9[%c0_27, %c0_28, %c0_29] : memref<1x16x128xbf16, #tpu.memory_space<vmem>>, vector<1x16x128xbf16>
      %62 = vector.shape_cast %61 : vector<1x16x128xbf16> to vector<16x128xbf16>
      %63 = arith.extf %62 : vector<16x128xbf16> to vector<16x128xf32>
      %64 = arith.addf %60, %63 : vector<16x128xf32>
      %cst_30 = arith.constant 5.000000e-01 : f32
      %65 = vector.broadcast %cst_30 : f32 to vector<16x128xf32>
      %66 = arith.mulf %64, %65 : vector<16x128xf32>
      %67 = arith.truncf %66 : vector<16x128xf32> to vector<16x128xbf16>
      %c0_31 = arith.constant 0 : index
      %c0_32 = arith.constant 0 : index
      %c0_33 = arith.constant 0 : index
      %68 = vector.load %arg10[%c0_31, %c0_32, %c0_33] : memref<1x16x128xbf16, #tpu.memory_space<vmem>>, vector<1x16x128xbf16>
      %69 = vector.shape_cast %68 : vector<1x16x128xbf16> to vector<16x128xbf16>
      %70 = vector.shape_cast %67 : vector<16x128xbf16> to vector<1x16x128xbf16>
      tpu.vector_store %arg10[%c0_31, %c0_32, %c0_33], %70 {strides = array<i32>} : memref<1x16x128xbf16, #tpu.memory_space<vmem>>, vector<1x16x128xbf16>,
    } else {
    }
    return
  }
  func.func @transform_0(%arg0: i32, %arg1: i32, %arg2: memref<1xi32, #tpu.memory_space<smem>>) -> (i32, i32, i32) {
    %c0_i32 = arith.constant 0 : i32
    %c0_i32_0 = arith.constant 0 : i32
    %c0_i32_1 = arith.constant 0 : i32
    %c0_i32_2 = arith.constant 0 : i32
    return %c0_i32, %c0_i32_0, %c0_i32_1 : i32, i32, i32
  }
  func.func @transform_1(%arg0: i32, %arg1: i32, %arg2: memref<1xi32, #tpu.memory_space<smem>>) -> (i32, i32) {
    %c0_i32 = arith.constant 0 : i32
    %c0_i32_0 = arith.constant 0 : i32
    return %c0_i32, %arg1 : i32, i32
  }
  func.func @transform_2(%arg0: i32, %arg1: i32, %arg2: memref<1xi32, #tpu.memory_space<smem>>) -> (i32, i32) {
    %c0_i32 = arith.constant 0 : i32
    %c0_i32_0 = arith.constant 0 : i32
    return %c0_i32, %arg1 : i32, i32
  }
  func.func @transform_3(%arg0: i32, %arg1: i32, %arg2: memref<1xi32, #tpu.memory_space<smem>>) -> (i32, i32) {
    %c0_i32 = arith.constant 0 : i32
    %c0_i32_0 = arith.constant 0 : i32
    %c0_i32_1 = arith.constant 0 : i32
    return %c0_i32, %c0_i32_0 : i32, i32
  }
  func.func @transform_4(%arg0: i32, %arg1: i32, %arg2: memref<1xi32, #tpu.memory_space<smem>>) -> (i32, i32) {
    %c0_i32 = arith.constant 0 : i32
    return %arg1, %arg0 : i32, i32
  }
  func.func @transform_5(%arg0: i32, %arg1: i32, %arg2: memref<1xi32, #tpu.memory_space<smem>>) -> (i32, i32) {
    %c0_i32 = arith.constant 0 : i32
    %c0_i32_0 = arith.constant 0 : i32
    return %c0_i32, %arg0 : i32, i32
  }
  func.func @transform_6(%arg0: i32, %arg1: i32, %arg2: memref<1xi32, #tpu.memory_space<smem>>) -> (i32, i32, i32) {
    %c0_i32 = arith.constant 0 : i32
    %c0_i32_0 = arith.constant 0 : i32
    %c0_i32_1 = arith.constant 0 : i32
    return %arg0, %c0_i32, %c0_i32_0 : i32, i32, i32
  }
  func.func @transform_7(%arg0: i32, %arg1: i32, %arg2: memref<1xi32, #tpu.memory_space<smem>>) -> (i32, i32, i32) {
    %c0_i32 = arith.constant 0 : i32
    %c0_i32_0 = arith.constant 0 : i32
    %c0_i32_1 = arith.constant 0 : i32
    return %arg0, %c0_i32, %c0_i32_0 : i32, i32, i32
  }
}

module attributes {stable_mosaic.version = 11 : i64} {
  func.func @_bn_linear_kernel(%arg0: i32, %arg1: i32, %arg2: memref<1xi32, #tpu.memory_space<smem>>, %arg3: memref<2x16x128xbf16, #tpu.memory_space<vmem>>, %arg4: memref<1x128xf32, #tpu.memory_space<vmem>>, %arg5: memref<1x128xf32, #tpu.memory_space<vmem>>, %arg6: memref<1x1xf32, #tpu.memory_space<vmem>>, %arg7: memref<128x128xbf16, #tpu.memory_space<vmem>>, %arg8: memref<1x128xf32, #tpu.memory_space<vmem>>, %arg9: memref<1x16x128xbf16, #tpu.memory_space<vmem>>, %arg10: memref<16x128xf32, #tpu.memory_space<vmem>>) attributes {dimension_semantics = [#tpu.dimension_semantics<parallel>, #tpu.dimension_semantics<arbitrary>], iteration_bounds = array<i64: 2, 2>, scalar_prefetch = 1 : i64, scratch_operands = 1 : i64, tpu.core_type = #tpu.core_type<tc>, window_params = [{pipeline_mode = #tpu.pipeline_mode<synchronous>, transform_indices = @transform_0, window_bounds = array<i64: 2, 16, 128>}, {transform_indices = @transform_1, window_bounds = array<i64: 1, 128>}, {transform_indices = @transform_2, window_bounds = array<i64: 1, 128>}, {pipeline_mode = #tpu.pipeline_mode<synchronous>, transform_indices = @transform_3, window_bounds = array<i64: 1, 1>}, {transform_indices = @transform_4, window_bounds = array<i64: 128, 128>}, {transform_indices = @transform_5, window_bounds = array<i64: 1, 128>}, {transform_indices = @transform_6, window_bounds = array<i64: 1, 16, 128>}]} {
    %c0_i32 = arith.constant 0 : i32
    %0 = arith.cmpi eq, %arg1, %c0_i32 : i32
    %1 = arith.extui %0 : i1 to i32
    %c0_i32_0 = arith.constant 0 : i32
    %2 = arith.cmpi ne, %1, %c0_i32_0 : i32
    scf.if %2 {
      %cst_23 = arith.constant 0.000000e+00 : f32
      %57 = vector.broadcast %cst_23 : f32 to vector<16x128xf32>
      %c0_24 = arith.constant 0 : index
      %c0_25 = arith.constant 0 : index
      %58 = vector.load %arg10[%c0_24, %c0_25] : memref<16x128xf32, #tpu.memory_space<vmem>>, vector<16x128xf32>
      tpu.vector_store %arg10[%c0_24, %c0_25], %57 {strides = array<i32>} : memref<16x128xf32, #tpu.memory_space<vmem>>, vector<16x128xf32>,
    } else {
    }
    %3 = arith.index_cast %arg1 : i32 to index
    %c0 = arith.constant 0 : index
    %c0_1 = arith.constant 0 : index
    %4 = vector.load %arg3[%3, %c0, %c0_1] : memref<2x16x128xbf16, #tpu.memory_space<vmem>>, vector<1x16x128xbf16>
    %5 = vector.shape_cast %4 : vector<1x16x128xbf16> to vector<16x128xbf16>
    %6 = arith.extf %5 : vector<16x128xbf16> to vector<16x128xf32>
    %c0_2 = arith.constant 0 : index
    %7 = memref.load %arg2[%c0_2] : memref<1xi32, #tpu.memory_space<smem>>
    %8 = arith.sitofp %7 : i32 to f32
    %cst = arith.constant 1.000000e+00 : f32
    %9 = arith.divf %cst, %8 : f32
    %10 = tpu.iota {dimensions = array<i32: 0>} : vector<16x1xi32>
    %11 = vector.broadcast %7 : i32 to vector<16x1xi32>
    %12 = arith.cmpi slt, %10, %11 : vector<16x1xi32>
    %cst_3 = arith.constant 0.000000e+00 : f32
    %13 = vector.shape_cast %12 : vector<16x1xi1> to vector<16x1xi1>
    %14 = vector.broadcast %13 : vector<16x1xi1> to vector<16x128xi1>
    %15 = vector.broadcast %cst_3 : f32 to vector<16x128xf32>
    %16 = arith.select %14, %6, %15 : vector<16x128xi1>, vector<16x128xf32>
    %cst_4 = arith.constant dense<0.000000e+00> : vector<128xf32>
    %17 = vector.multi_reduction <add>, %16, %cst_4 [0] : vector<16x128xf32> to vector<128xf32>
    %18 = vector.shape_cast %17 : vector<128xf32> to vector<1x128xf32>
    %19 = vector.broadcast %9 : f32 to vector<1x128xf32>
    %20 = arith.mulf %18, %19 : vector<1x128xf32>
    %21 = vector.broadcast %20 : vector<1x128xf32> to vector<16x128xf32>
    %22 = arith.subf %6, %21 : vector<16x128xf32>
    %cst_5 = arith.constant 0.000000e+00 : f32
    %23 = vector.shape_cast %12 : vector<16x1xi1> to vector<16x1xi1>
    %24 = vector.broadcast %23 : vector<16x1xi1> to vector<16x128xi1>
    %25 = vector.broadcast %cst_5 : f32 to vector<16x128xf32>
    %26 = arith.select %24, %22, %25 : vector<16x128xi1>, vector<16x128xf32>
    %27 = arith.mulf %26, %26 : vector<16x128xf32>
    %cst_6 = arith.constant dense<0.000000e+00> : vector<128xf32>
    %28 = vector.multi_reduction <add>, %27, %cst_6 [0] : vector<16x128xf32> to vector<128xf32>
    %29 = vector.shape_cast %28 : vector<128xf32> to vector<1x128xf32>
    %30 = vector.broadcast %9 : f32 to vector<1x128xf32>
    %31 = arith.mulf %29, %30 : vector<1x128xf32>
    %c0_7 = arith.constant 0 : index
    %c0_8 = arith.constant 0 : index
    %32 = vector.load %arg4[%c0_7, %c0_8] : memref<1x128xf32, #tpu.memory_space<vmem>>, vector<1x128xf32>
    %cst_9 = arith.constant 9.99999974E-6 : f32
    %33 = vector.broadcast %cst_9 : f32 to vector<1x128xf32>
    %34 = arith.addf %31, %33 : vector<1x128xf32>
    %35 = math.rsqrt %34 : vector<1x128xf32>
    %36 = arith.mulf %32, %35 : vector<1x128xf32>
    %37 = vector.broadcast %36 : vector<1x128xf32> to vector<16x128xf32>
    %38 = arith.mulf %26, %37 : vector<16x128xf32>
    %c0_10 = arith.constant 0 : index
    %c0_11 = arith.constant 0 : index
    %39 = vector.load %arg5[%c0_10, %c0_11] : memref<1x128xf32, #tpu.memory_space<vmem>>, vector<1x128xf32>
    %40 = vector.broadcast %39 : vector<1x128xf32> to vector<16x128xf32>
    %41 = arith.addf %38, %40 : vector<16x128xf32>
    %cst_12 = arith.constant 0.000000e+00 : f32
    %42 = vector.broadcast %cst_12 : f32 to vector<16x128xf32>
    %43 = arith.cmpf oge, %41, %42 : vector<16x128xf32>
    %c0_13 = arith.constant 0 : index
    %c0_14 = arith.constant 0 : index
    %44 = vector.load %arg6[%c0_13, %c0_14] : memref<1x1xf32, #tpu.memory_space<vmem>>, vector<1x1xf32>
    %45 = vector.broadcast %44 : vector<1x1xf32> to vector<16x128xf32>
    %46 = arith.mulf %41, %45 : vector<16x128xf32>
    %47 = arith.select %43, %41, %46 : vector<16x128xi1>, vector<16x128xf32>
    %c0_15 = arith.constant 0 : index
    %c0_16 = arith.constant 0 : index
    %48 = vector.load %arg10[%c0_15, %c0_16] : memref<16x128xf32, #tpu.memory_space<vmem>>, vector<16x128xf32>
    %49 = arith.truncf %47 : vector<16x128xf32> to vector<16x128xbf16>
    %c0_17 = arith.constant 0 : index
    %c0_18 = arith.constant 0 : index
    %50 = vector.load %arg7[%c0_17, %c0_18] : memref<128x128xbf16, #tpu.memory_space<vmem>>, vector<128x128xbf16>
    %cst_19 = arith.constant dense<0.000000e+00> : vector<16x128xf32>
    %51 = tpu.matmul %49, %50, %cst_19 {dimension_numbers = #tpu.dot_dimension_numbers<[1], [0], [0], [1], [0, 0, 1, 1], [], []>} : vector<16x128xbf16>, vector<128x128xbf16>, vector<16x128xf32> -> vector<16x128xf32>
    %52 = arith.addf %48, %51 : vector<16x128xf32>
    %c0_20 = arith.constant 0 : index
    %c0_21 = arith.constant 0 : index
    %53 = vector.load %arg10[%c0_20, %c0_21] : memref<16x128xf32, #tpu.memory_space<vmem>>, vector<16x128xf32>
    tpu.vector_store %arg10[%c0_20, %c0_21], %52 {strides = array<i32>} : memref<16x128xf32, #tpu.memory_space<vmem>>, vector<16x128xf32>,
    %c1_i32 = arith.constant 1 : i32
    %54 = arith.cmpi eq, %arg1, %c1_i32 : i32
    %55 = arith.extui %54 : i1 to i32
    %c0_i32_22 = arith.constant 0 : i32
    %56 = arith.cmpi ne, %55, %c0_i32_22 : i32
    scf.if %56 {
      %c0_23 = arith.constant 0 : index
      %c0_24 = arith.constant 0 : index
      %57 = vector.load %arg10[%c0_23, %c0_24] : memref<16x128xf32, #tpu.memory_space<vmem>>, vector<16x128xf32>
      %c0_25 = arith.constant 0 : index
      %c0_26 = arith.constant 0 : index
      %58 = vector.load %arg8[%c0_25, %c0_26] : memref<1x128xf32, #tpu.memory_space<vmem>>, vector<1x128xf32>
      %59 = vector.broadcast %58 : vector<1x128xf32> to vector<16x128xf32>
      %60 = arith.addf %57, %59 : vector<16x128xf32>
      %61 = arith.truncf %60 : vector<16x128xf32> to vector<16x128xbf16>
      %c0_27 = arith.constant 0 : index
      %c0_28 = arith.constant 0 : index
      %c0_29 = arith.constant 0 : index
      %62 = vector.load %arg9[%c0_27, %c0_28, %c0_29] : memref<1x16x128xbf16, #tpu.memory_space<vmem>>, vector<1x16x128xbf16>
      %63 = vector.shape_cast %62 : vector<1x16x128xbf16> to vector<16x128xbf16>
      %64 = vector.shape_cast %61 : vector<16x128xbf16> to vector<1x16x128xbf16>
      tpu.vector_store %arg9[%c0_27, %c0_28, %c0_29], %64 {strides = array<i32>} : memref<1x16x128xbf16, #tpu.memory_space<vmem>>, vector<1x16x128xbf16>,
    } else {
    }
    return
  }
  func.func @transform_0(%arg0: i32, %arg1: i32, %arg2: memref<1xi32, #tpu.memory_space<smem>>) -> (i32, i32, i32) {
    %c0_i32 = arith.constant 0 : i32
    %c0_i32_0 = arith.constant 0 : i32
    %c0_i32_1 = arith.constant 0 : i32
    %c0_i32_2 = arith.constant 0 : i32
    return %c0_i32, %c0_i32_0, %c0_i32_1 : i32, i32, i32
  }
  func.func @transform_1(%arg0: i32, %arg1: i32, %arg2: memref<1xi32, #tpu.memory_space<smem>>) -> (i32, i32) {
    %c0_i32 = arith.constant 0 : i32
    %c0_i32_0 = arith.constant 0 : i32
    return %c0_i32, %arg1 : i32, i32
  }
  func.func @transform_2(%arg0: i32, %arg1: i32, %arg2: memref<1xi32, #tpu.memory_space<smem>>) -> (i32, i32) {
    %c0_i32 = arith.constant 0 : i32
    %c0_i32_0 = arith.constant 0 : i32
    return %c0_i32, %arg1 : i32, i32
  }
  func.func @transform_3(%arg0: i32, %arg1: i32, %arg2: memref<1xi32, #tpu.memory_space<smem>>) -> (i32, i32) {
    %c0_i32 = arith.constant 0 : i32
    %c0_i32_0 = arith.constant 0 : i32
    %c0_i32_1 = arith.constant 0 : i32
    return %c0_i32, %c0_i32_0 : i32, i32
  }
  func.func @transform_4(%arg0: i32, %arg1: i32, %arg2: memref<1xi32, #tpu.memory_space<smem>>) -> (i32, i32) {
    %c0_i32 = arith.constant 0 : i32
    return %arg1, %arg0 : i32, i32
  }
  func.func @transform_5(%arg0: i32, %arg1: i32, %arg2: memref<1xi32, #tpu.memory_space<smem>>) -> (i32, i32) {
    %c0_i32 = arith.constant 0 : i32
    %c0_i32_0 = arith.constant 0 : i32
    return %c0_i32, %arg0 : i32, i32
  }
  func.func @transform_6(%arg0: i32, %arg1: i32, %arg2: memref<1xi32, #tpu.memory_space<smem>>) -> (i32, i32, i32) {
    %c0_i32 = arith.constant 0 : i32
    %c0_i32_0 = arith.constant 0 : i32
    %c0_i32_1 = arith.constant 0 : i32
    return %arg0, %c0_i32, %c0_i32_0 : i32, i32, i32
  }
}

module attributes {stable_mosaic.version = 11 : i64} {
  func.func @_bn_linear_kernel(%arg0: i32, %arg1: i32, %arg2: memref<1xi32, #tpu.memory_space<smem>>, %arg3: memref<1x16x128xbf16, #tpu.memory_space<vmem>>, %arg4: memref<1x128xf32, #tpu.memory_space<vmem>>, %arg5: memref<1x128xf32, #tpu.memory_space<vmem>>, %arg6: memref<128x128xbf16, #tpu.memory_space<vmem>>, %arg7: memref<1x128xf32, #tpu.memory_space<vmem>>, %arg8: memref<1x16x128xbf16, #tpu.memory_space<vmem>>, %arg9: memref<16x128xf32, #tpu.memory_space<vmem>>) attributes {dimension_semantics = [#tpu.dimension_semantics<parallel>, #tpu.dimension_semantics<arbitrary>], iteration_bounds = array<i64: 2, 1>, scalar_prefetch = 1 : i64, scratch_operands = 1 : i64, tpu.core_type = #tpu.core_type<tc>, window_params = [{pipeline_mode = #tpu.pipeline_mode<synchronous>, transform_indices = @transform_0, window_bounds = array<i64: 1, 16, 128>}, {transform_indices = @transform_1, window_bounds = array<i64: 1, 128>}, {transform_indices = @transform_2, window_bounds = array<i64: 1, 128>}, {transform_indices = @transform_3, window_bounds = array<i64: 128, 128>}, {transform_indices = @transform_4, window_bounds = array<i64: 1, 128>}, {transform_indices = @transform_5, window_bounds = array<i64: 1, 16, 128>}]} {
    %c0_i32 = arith.constant 0 : i32
    %0 = arith.cmpi eq, %arg1, %c0_i32 : i32
    %1 = arith.extui %0 : i1 to i32
    %c0_i32_0 = arith.constant 0 : i32
    %2 = arith.cmpi ne, %1, %c0_i32_0 : i32
    scf.if %2 {
      %cst_21 = arith.constant 0.000000e+00 : f32
      %51 = vector.broadcast %cst_21 : f32 to vector<16x128xf32>
      %c0_22 = arith.constant 0 : index
      %c0_23 = arith.constant 0 : index
      %52 = vector.load %arg9[%c0_22, %c0_23] : memref<16x128xf32, #tpu.memory_space<vmem>>, vector<16x128xf32>
      tpu.vector_store %arg9[%c0_22, %c0_23], %51 {strides = array<i32>} : memref<16x128xf32, #tpu.memory_space<vmem>>, vector<16x128xf32>,
    } else {
    }
    %3 = arith.index_cast %arg1 : i32 to index
    %c0 = arith.constant 0 : index
    %c0_1 = arith.constant 0 : index
    %4 = vector.load %arg3[%3, %c0, %c0_1] : memref<1x16x128xbf16, #tpu.memory_space<vmem>>, vector<1x16x128xbf16>
    %5 = vector.shape_cast %4 : vector<1x16x128xbf16> to vector<16x128xbf16>
    %6 = arith.extf %5 : vector<16x128xbf16> to vector<16x128xf32>
    %c0_2 = arith.constant 0 : index
    %7 = memref.load %arg2[%c0_2] : memref<1xi32, #tpu.memory_space<smem>>
    %8 = arith.sitofp %7 : i32 to f32
    %cst = arith.constant 1.000000e+00 : f32
    %9 = arith.divf %cst, %8 : f32
    %10 = tpu.iota {dimensions = array<i32: 0>} : vector<16x1xi32>
    %11 = vector.broadcast %7 : i32 to vector<16x1xi32>
    %12 = arith.cmpi slt, %10, %11 : vector<16x1xi32>
    %cst_3 = arith.constant 0.000000e+00 : f32
    %13 = vector.shape_cast %12 : vector<16x1xi1> to vector<16x1xi1>
    %14 = vector.broadcast %13 : vector<16x1xi1> to vector<16x128xi1>
    %15 = vector.broadcast %cst_3 : f32 to vector<16x128xf32>
    %16 = arith.select %14, %6, %15 : vector<16x128xi1>, vector<16x128xf32>
    %cst_4 = arith.constant dense<0.000000e+00> : vector<128xf32>
    %17 = vector.multi_reduction <add>, %16, %cst_4 [0] : vector<16x128xf32> to vector<128xf32>
    %18 = vector.shape_cast %17 : vector<128xf32> to vector<1x128xf32>
    %19 = vector.broadcast %9 : f32 to vector<1x128xf32>
    %20 = arith.mulf %18, %19 : vector<1x128xf32>
    %21 = vector.broadcast %20 : vector<1x128xf32> to vector<16x128xf32>
    %22 = arith.subf %6, %21 : vector<16x128xf32>
    %cst_5 = arith.constant 0.000000e+00 : f32
    %23 = vector.shape_cast %12 : vector<16x1xi1> to vector<16x1xi1>
    %24 = vector.broadcast %23 : vector<16x1xi1> to vector<16x128xi1>
    %25 = vector.broadcast %cst_5 : f32 to vector<16x128xf32>
    %26 = arith.select %24, %22, %25 : vector<16x128xi1>, vector<16x128xf32>
    %27 = arith.mulf %26, %26 : vector<16x128xf32>
    %cst_6 = arith.constant dense<0.000000e+00> : vector<128xf32>
    %28 = vector.multi_reduction <add>, %27, %cst_6 [0] : vector<16x128xf32> to vector<128xf32>
    %29 = vector.shape_cast %28 : vector<128xf32> to vector<1x128xf32>
    %30 = vector.broadcast %9 : f32 to vector<1x128xf32>
    %31 = arith.mulf %29, %30 : vector<1x128xf32>
    %c0_7 = arith.constant 0 : index
    %c0_8 = arith.constant 0 : index
    %32 = vector.load %arg4[%c0_7, %c0_8] : memref<1x128xf32, #tpu.memory_space<vmem>>, vector<1x128xf32>
    %cst_9 = arith.constant 9.99999974E-6 : f32
    %33 = vector.broadcast %cst_9 : f32 to vector<1x128xf32>
    %34 = arith.addf %31, %33 : vector<1x128xf32>
    %35 = math.rsqrt %34 : vector<1x128xf32>
    %36 = arith.mulf %32, %35 : vector<1x128xf32>
    %37 = vector.broadcast %36 : vector<1x128xf32> to vector<16x128xf32>
    %38 = arith.mulf %26, %37 : vector<16x128xf32>
    %c0_10 = arith.constant 0 : index
    %c0_11 = arith.constant 0 : index
    %39 = vector.load %arg5[%c0_10, %c0_11] : memref<1x128xf32, #tpu.memory_space<vmem>>, vector<1x128xf32>
    %40 = vector.broadcast %39 : vector<1x128xf32> to vector<16x128xf32>
    %41 = arith.addf %38, %40 : vector<16x128xf32>
    %c0_12 = arith.constant 0 : index
    %c0_13 = arith.constant 0 : index
    %42 = vector.load %arg9[%c0_12, %c0_13] : memref<16x128xf32, #tpu.memory_space<vmem>>, vector<16x128xf32>
    %43 = arith.truncf %41 : vector<16x128xf32> to vector<16x128xbf16>
    %c0_14 = arith.constant 0 : index
    %c0_15 = arith.constant 0 : index
    %44 = vector.load %arg6[%c0_14, %c0_15] : memref<128x128xbf16, #tpu.memory_space<vmem>>, vector<128x128xbf16>
    %cst_16 = arith.constant dense<0.000000e+00> : vector<16x128xf32>
    %45 = tpu.matmul %43, %44, %cst_16 {dimension_numbers = #tpu.dot_dimension_numbers<[1], [0], [0], [1], [0, 0, 1, 1], [], []>} : vector<16x128xbf16>, vector<128x128xbf16>, vector<16x128xf32> -> vector<16x128xf32>
    %46 = arith.addf %42, %45 : vector<16x128xf32>
    %c0_17 = arith.constant 0 : index
    %c0_18 = arith.constant 0 : index
    %47 = vector.load %arg9[%c0_17, %c0_18] : memref<16x128xf32, #tpu.memory_space<vmem>>, vector<16x128xf32>
    tpu.vector_store %arg9[%c0_17, %c0_18], %46 {strides = array<i32>} : memref<16x128xf32, #tpu.memory_space<vmem>>, vector<16x128xf32>,
    %c0_i32_19 = arith.constant 0 : i32
    %48 = arith.cmpi eq, %arg1, %c0_i32_19 : i32
    %49 = arith.extui %48 : i1 to i32
    %c0_i32_20 = arith.constant 0 : i32
    %50 = arith.cmpi ne, %49, %c0_i32_20 : i32
    scf.if %50 {
      %c0_21 = arith.constant 0 : index
      %c0_22 = arith.constant 0 : index
      %51 = vector.load %arg9[%c0_21, %c0_22] : memref<16x128xf32, #tpu.memory_space<vmem>>, vector<16x128xf32>
      %c0_23 = arith.constant 0 : index
      %c0_24 = arith.constant 0 : index
      %52 = vector.load %arg7[%c0_23, %c0_24] : memref<1x128xf32, #tpu.memory_space<vmem>>, vector<1x128xf32>
      %53 = vector.broadcast %52 : vector<1x128xf32> to vector<16x128xf32>
      %54 = arith.addf %51, %53 : vector<16x128xf32>
      %55 = arith.truncf %54 : vector<16x128xf32> to vector<16x128xbf16>
      %c0_25 = arith.constant 0 : index
      %c0_26 = arith.constant 0 : index
      %c0_27 = arith.constant 0 : index
      %56 = vector.load %arg8[%c0_25, %c0_26, %c0_27] : memref<1x16x128xbf16, #tpu.memory_space<vmem>>, vector<1x16x128xbf16>
      %57 = vector.shape_cast %56 : vector<1x16x128xbf16> to vector<16x128xbf16>
      %58 = vector.shape_cast %55 : vector<16x128xbf16> to vector<1x16x128xbf16>
      tpu.vector_store %arg8[%c0_25, %c0_26, %c0_27], %58 {strides = array<i32>} : memref<1x16x128xbf16, #tpu.memory_space<vmem>>, vector<1x16x128xbf16>,
    } else {
    }
    return
  }
  func.func @transform_0(%arg0: i32, %arg1: i32, %arg2: memref<1xi32, #tpu.memory_space<smem>>) -> (i32, i32, i32) {
    %c0_i32 = arith.constant 0 : i32
    %c0_i32_0 = arith.constant 0 : i32
    %c0_i32_1 = arith.constant 0 : i32
    %c0_i32_2 = arith.constant 0 : i32
    return %c0_i32, %c0_i32_0, %c0_i32_1 : i32, i32, i32
  }
  func.func @transform_1(%arg0: i32, %arg1: i32, %arg2: memref<1xi32, #tpu.memory_space<smem>>) -> (i32, i32) {
    %c0_i32 = arith.constant 0 : i32
    %c0_i32_0 = arith.constant 0 : i32
    return %c0_i32, %arg1 : i32, i32
  }
  func.func @transform_2(%arg0: i32, %arg1: i32, %arg2: memref<1xi32, #tpu.memory_space<smem>>) -> (i32, i32) {
    %c0_i32 = arith.constant 0 : i32
    %c0_i32_0 = arith.constant 0 : i32
    return %c0_i32, %arg1 : i32, i32
  }
  func.func @transform_3(%arg0: i32, %arg1: i32, %arg2: memref<1xi32, #tpu.memory_space<smem>>) -> (i32, i32) {
    %c0_i32 = arith.constant 0 : i32
    return %arg1, %arg0 : i32, i32
  }
  func.func @transform_4(%arg0: i32, %arg1: i32, %arg2: memref<1xi32, #tpu.memory_space<smem>>) -> (i32, i32) {
    %c0_i32 = arith.constant 0 : i32
    %c0_i32_0 = arith.constant 0 : i32
    return %c0_i32, %arg0 : i32, i32
  }
  func.func @transform_5(%arg0: i32, %arg1: i32, %arg2: memref<1xi32, #tpu.memory_space<smem>>) -> (i32, i32, i32) {
    %c0_i32 = arith.constant 0 : i32
    %c0_i32_0 = arith.constant 0 : i32
    %c0_i32_1 = arith.constant 0 : i32
    return %arg0, %c0_i32, %c0_i32_0 : i32, i32, i32
  }
}

module attributes {stable_mosaic.version = 11 : i64} {
  func.func @_bn_linear_kernel(%arg0: i32, %arg1: i32, %arg2: memref<1xi32, #tpu.memory_space<smem>>, %arg3: memref<2x16x128xbf16, #tpu.memory_space<vmem>>, %arg4: memref<1x128xf32, #tpu.memory_space<vmem>>, %arg5: memref<1x128xf32, #tpu.memory_space<vmem>>, %arg6: memref<1x1xf32, #tpu.memory_space<vmem>>, %arg7: memref<128x128xbf16, #tpu.memory_space<vmem>>, %arg8: memref<1x128xf32, #tpu.memory_space<vmem>>, %arg9: memref<16x128xf32, #tpu.memory_space<vmem>>, %arg10: memref<16x128xf32, #tpu.memory_space<vmem>>) attributes {dimension_semantics = [#tpu.dimension_semantics<parallel>, #tpu.dimension_semantics<arbitrary>], iteration_bounds = array<i64: 1, 2>, scalar_prefetch = 1 : i64, scratch_operands = 1 : i64, tpu.core_type = #tpu.core_type<tc>, window_params = [{pipeline_mode = #tpu.pipeline_mode<synchronous>, transform_indices = @transform_0, window_bounds = array<i64: 2, 16, 128>}, {transform_indices = @transform_1, window_bounds = array<i64: 1, 128>}, {transform_indices = @transform_2, window_bounds = array<i64: 1, 128>}, {pipeline_mode = #tpu.pipeline_mode<synchronous>, transform_indices = @transform_3, window_bounds = array<i64: 1, 1>}, {transform_indices = @transform_4, window_bounds = array<i64: 128, 128>}, {transform_indices = @transform_5, window_bounds = array<i64: 1, 128>}, {transform_indices = @transform_6, window_bounds = array<i64: 16, 128>}]} {
    %c0_i32 = arith.constant 0 : i32
    %0 = arith.cmpi eq, %arg1, %c0_i32 : i32
    %1 = arith.extui %0 : i1 to i32
    %c0_i32_0 = arith.constant 0 : i32
    %2 = arith.cmpi ne, %1, %c0_i32_0 : i32
    scf.if %2 {
      %cst_23 = arith.constant 0.000000e+00 : f32
      %57 = vector.broadcast %cst_23 : f32 to vector<16x128xf32>
      %c0_24 = arith.constant 0 : index
      %c0_25 = arith.constant 0 : index
      %58 = vector.load %arg10[%c0_24, %c0_25] : memref<16x128xf32, #tpu.memory_space<vmem>>, vector<16x128xf32>
      tpu.vector_store %arg10[%c0_24, %c0_25], %57 {strides = array<i32>} : memref<16x128xf32, #tpu.memory_space<vmem>>, vector<16x128xf32>,
    } else {
    }
    %3 = arith.index_cast %arg1 : i32 to index
    %c0 = arith.constant 0 : index
    %c0_1 = arith.constant 0 : index
    %4 = vector.load %arg3[%3, %c0, %c0_1] : memref<2x16x128xbf16, #tpu.memory_space<vmem>>, vector<1x16x128xbf16>
    %5 = vector.shape_cast %4 : vector<1x16x128xbf16> to vector<16x128xbf16>
    %6 = arith.extf %5 : vector<16x128xbf16> to vector<16x128xf32>
    %c0_2 = arith.constant 0 : index
    %7 = memref.load %arg2[%c0_2] : memref<1xi32, #tpu.memory_space<smem>>
    %8 = arith.sitofp %7 : i32 to f32
    %cst = arith.constant 1.000000e+00 : f32
    %9 = arith.divf %cst, %8 : f32
    %10 = tpu.iota {dimensions = array<i32: 0>} : vector<16x1xi32>
    %11 = vector.broadcast %7 : i32 to vector<16x1xi32>
    %12 = arith.cmpi slt, %10, %11 : vector<16x1xi32>
    %cst_3 = arith.constant 0.000000e+00 : f32
    %13 = vector.shape_cast %12 : vector<16x1xi1> to vector<16x1xi1>
    %14 = vector.broadcast %13 : vector<16x1xi1> to vector<16x128xi1>
    %15 = vector.broadcast %cst_3 : f32 to vector<16x128xf32>
    %16 = arith.select %14, %6, %15 : vector<16x128xi1>, vector<16x128xf32>
    %cst_4 = arith.constant dense<0.000000e+00> : vector<128xf32>
    %17 = vector.multi_reduction <add>, %16, %cst_4 [0] : vector<16x128xf32> to vector<128xf32>
    %18 = vector.shape_cast %17 : vector<128xf32> to vector<1x128xf32>
    %19 = vector.broadcast %9 : f32 to vector<1x128xf32>
    %20 = arith.mulf %18, %19 : vector<1x128xf32>
    %21 = vector.broadcast %20 : vector<1x128xf32> to vector<16x128xf32>
    %22 = arith.subf %6, %21 : vector<16x128xf32>
    %cst_5 = arith.constant 0.000000e+00 : f32
    %23 = vector.shape_cast %12 : vector<16x1xi1> to vector<16x1xi1>
    %24 = vector.broadcast %23 : vector<16x1xi1> to vector<16x128xi1>
    %25 = vector.broadcast %cst_5 : f32 to vector<16x128xf32>
    %26 = arith.select %24, %22, %25 : vector<16x128xi1>, vector<16x128xf32>
    %27 = arith.mulf %26, %26 : vector<16x128xf32>
    %cst_6 = arith.constant dense<0.000000e+00> : vector<128xf32>
    %28 = vector.multi_reduction <add>, %27, %cst_6 [0] : vector<16x128xf32> to vector<128xf32>
    %29 = vector.shape_cast %28 : vector<128xf32> to vector<1x128xf32>
    %30 = vector.broadcast %9 : f32 to vector<1x128xf32>
    %31 = arith.mulf %29, %30 : vector<1x128xf32>
    %c0_7 = arith.constant 0 : index
    %c0_8 = arith.constant 0 : index
    %32 = vector.load %arg4[%c0_7, %c0_8] : memref<1x128xf32, #tpu.memory_space<vmem>>, vector<1x128xf32>
    %cst_9 = arith.constant 9.99999974E-6 : f32
    %33 = vector.broadcast %cst_9 : f32 to vector<1x128xf32>
    %34 = arith.addf %31, %33 : vector<1x128xf32>
    %35 = math.rsqrt %34 : vector<1x128xf32>
    %36 = arith.mulf %32, %35 : vector<1x128xf32>
    %37 = vector.broadcast %36 : vector<1x128xf32> to vector<16x128xf32>
    %38 = arith.mulf %26, %37 : vector<16x128xf32>
    %c0_10 = arith.constant 0 : index
    %c0_11 = arith.constant 0 : index
    %39 = vector.load %arg5[%c0_10, %c0_11] : memref<1x128xf32, #tpu.memory_space<vmem>>, vector<1x128xf32>
    %40 = vector.broadcast %39 : vector<1x128xf32> to vector<16x128xf32>
    %41 = arith.addf %38, %40 : vector<16x128xf32>
    %cst_12 = arith.constant 0.000000e+00 : f32
    %42 = vector.broadcast %cst_12 : f32 to vector<16x128xf32>
    %43 = arith.cmpf oge, %41, %42 : vector<16x128xf32>
    %c0_13 = arith.constant 0 : index
    %c0_14 = arith.constant 0 : index
    %44 = vector.load %arg6[%c0_13, %c0_14] : memref<1x1xf32, #tpu.memory_space<vmem>>, vector<1x1xf32>
    %45 = vector.broadcast %44 : vector<1x1xf32> to vector<16x128xf32>
    %46 = arith.mulf %41, %45 : vector<16x128xf32>
    %47 = arith.select %43, %41, %46 : vector<16x128xi1>, vector<16x128xf32>
    %c0_15 = arith.constant 0 : index
    %c0_16 = arith.constant 0 : index
    %48 = vector.load %arg10[%c0_15, %c0_16] : memref<16x128xf32, #tpu.memory_space<vmem>>, vector<16x128xf32>
    %49 = arith.truncf %47 : vector<16x128xf32> to vector<16x128xbf16>
    %c0_17 = arith.constant 0 : index
    %c0_18 = arith.constant 0 : index
    %50 = vector.load %arg7[%c0_17, %c0_18] : memref<128x128xbf16, #tpu.memory_space<vmem>>, vector<128x128xbf16>
    %cst_19 = arith.constant dense<0.000000e+00> : vector<16x128xf32>
    %51 = tpu.matmul %49, %50, %cst_19 {dimension_numbers = #tpu.dot_dimension_numbers<[1], [0], [0], [1], [0, 0, 1, 1], [], []>} : vector<16x128xbf16>, vector<128x128xbf16>, vector<16x128xf32> -> vector<16x128xf32>
    %52 = arith.addf %48, %51 : vector<16x128xf32>
    %c0_20 = arith.constant 0 : index
    %c0_21 = arith.constant 0 : index
    %53 = vector.load %arg10[%c0_20, %c0_21] : memref<16x128xf32, #tpu.memory_space<vmem>>, vector<16x128xf32>
    tpu.vector_store %arg10[%c0_20, %c0_21], %52 {strides = array<i32>} : memref<16x128xf32, #tpu.memory_space<vmem>>, vector<16x128xf32>,
    %c1_i32 = arith.constant 1 : i32
    %54 = arith.cmpi eq, %arg1, %c1_i32 : i32
    %55 = arith.extui %54 : i1 to i32
    %c0_i32_22 = arith.constant 0 : i32
    %56 = arith.cmpi ne, %55, %c0_i32_22 : i32
    scf.if %56 {
      %c0_23 = arith.constant 0 : index
      %c0_24 = arith.constant 0 : index
      %57 = vector.load %arg10[%c0_23, %c0_24] : memref<16x128xf32, #tpu.memory_space<vmem>>, vector<16x128xf32>
      %c0_25 = arith.constant 0 : index
      %c0_26 = arith.constant 0 : index
      %58 = vector.load %arg8[%c0_25, %c0_26] : memref<1x128xf32, #tpu.memory_space<vmem>>, vector<1x128xf32>
      %59 = vector.broadcast %58 : vector<1x128xf32> to vector<16x128xf32>
      %60 = arith.addf %57, %59 : vector<16x128xf32>
      %c0_27 = arith.constant 0 : index
      %c0_28 = arith.constant 0 : index
      %61 = vector.load %arg9[%c0_27, %c0_28] : memref<16x128xf32, #tpu.memory_space<vmem>>, vector<16x128xf32>
      tpu.vector_store %arg9[%c0_27, %c0_28], %60 {strides = array<i32>} : memref<16x128xf32, #tpu.memory_space<vmem>>, vector<16x128xf32>,
    } else {
    }
    return
  }
  func.func @transform_0(%arg0: i32, %arg1: i32, %arg2: memref<1xi32, #tpu.memory_space<smem>>) -> (i32, i32, i32) {
    %c0_i32 = arith.constant 0 : i32
    %c0_i32_0 = arith.constant 0 : i32
    %c0_i32_1 = arith.constant 0 : i32
    %c0_i32_2 = arith.constant 0 : i32
    return %c0_i32, %c0_i32_0, %c0_i32_1 : i32, i32, i32
  }
  func.func @transform_1(%arg0: i32, %arg1: i32, %arg2: memref<1xi32, #tpu.memory_space<smem>>) -> (i32, i32) {
    %c0_i32 = arith.constant 0 : i32
    %c0_i32_0 = arith.constant 0 : i32
    return %c0_i32, %arg1 : i32, i32
  }
  func.func @transform_2(%arg0: i32, %arg1: i32, %arg2: memref<1xi32, #tpu.memory_space<smem>>) -> (i32, i32) {
    %c0_i32 = arith.constant 0 : i32
    %c0_i32_0 = arith.constant 0 : i32
    return %c0_i32, %arg1 : i32, i32
  }
  func.func @transform_3(%arg0: i32, %arg1: i32, %arg2: memref<1xi32, #tpu.memory_space<smem>>) -> (i32, i32) {
    %c0_i32 = arith.constant 0 : i32
    %c0_i32_0 = arith.constant 0 : i32
    %c0_i32_1 = arith.constant 0 : i32
    return %c0_i32, %c0_i32_0 : i32, i32
  }
  func.func @transform_4(%arg0: i32, %arg1: i32, %arg2: memref<1xi32, #tpu.memory_space<smem>>) -> (i32, i32) {
    %c0_i32 = arith.constant 0 : i32
    return %arg1, %arg0 : i32, i32
  }
  func.func @transform_5(%arg0: i32, %arg1: i32, %arg2: memref<1xi32, #tpu.memory_space<smem>>) -> (i32, i32) {
    %c0_i32 = arith.constant 0 : i32
    %c0_i32_0 = arith.constant 0 : i32
    return %c0_i32, %arg0 : i32, i32
  }
  func.func @transform_6(%arg0: i32, %arg1: i32, %arg2: memref<1xi32, #tpu.memory_space<smem>>) -> (i32, i32) {
    %c0_i32 = arith.constant 0 : i32
    %c0_i32_0 = arith.constant 0 : i32
    return %c0_i32, %arg0 : i32, i32
  }
}

</mosaic_0001>

<bundles_post_ra>
// kernel: linear_block.7
= control target key start
LH: loop header
LB: loop body
LE: loop exit
PB: predicated region body
PF: predicated region fallthrough
CT: control target
= control target key end

     0   :  { %s1270_s0 = inlined_call_operand.<no memory space> [shape: s32[1], index: 0, kind: input, shape index: {}]   ;;  %s1271_s1 = inlined_call_operand.vmem [shape: bf16[2,16,128], index: 1, kind: input, shape index: {}, may-alias: {1,7}]   ;;  %s1272_s2 = inlined_call_operand.vmem [shape: f32[1,256], index: 2, kind: input, shape index: {}]   ;;  %s1273_s3 = inlined_call_operand.vmem [shape: f32[1,256], index: 3, kind: input, shape index: {}]   ;;  %s1274_s4 = inlined_call_operand.<no memory space> [shape: f32[1,1], index: 4, kind: input, shape index: {}]   ;;  %s1275_s5 = inlined_call_operand.vmem [shape: bf16[256,256], index: 5, kind: input, shape index: {}]   ;;  %s1276_s6 = inlined_call_operand.vmem [shape: f32[1,256], index: 6, kind: input, shape index: {}]   ;;  %s1277_s7 = inlined_call_operand.vmem [shape: bf16[2,16,128], index: 7, kind: input, shape index: {}, may-alias: {1,7}]   ;;  %s1278_s8 = inlined_call_operand.vmem [shape: bf16[2,16,128], index: 8, kind: output, shape index: {}]  }
   0x1   :  { %1280 = sst [smem:[#allocation8_spill]] %s1275_s5  ;;  %v14_v0 = vstv %s1274_s4 }
   0x2   :  { %13 = sst [smem:[#allocation4]] %s1270_s0  ;;  %15 = vst [vmem:[#allocation5] sm:$0x1] %v14_v0 }
   0x3   :  { %s1084_s9 = smov 0   ;;  %s1086_s10 = smov 0  }
   0x4   :  { %s1088_s11 = smov 0   ;;  %s1090_s12 = smov 0  }
   0x5   :  { %s1092_s13 = smov 0   ;;  %s1094_s14 = smov 0  }
   0x6   :  { %s1096_s15 = smov 0  }
   0x7 LB: > { %s30_s0 = sadd.s32 1, %s1019_s13  ;;  %s33_s4 = sadd.s32 1, %s1023_s14  ;;  %s1027_s15 = sphi %s1096_s15, %s21_s15   ;;  %s1023_s14 = sphi %s1094_s14, %s1293_s14   ;;  %s1019_s13 = sphi %s1092_s13, %s1292_s13   ;;  %s1015_s12 = sphi %s1090_s12, %s1291_s12   ;;  %s1011_s11 = sphi %s1088_s11, %s1290_s11   ;;  %s1007_s10 = sphi %s1086_s10, %s1289_s10   ;;  %s1003_s9 = sphi %s1084_s9, %s1288_s9  }
   0x8   : > { %p31_p0 = scmp.ge.s32.totalorder %s30_s0, 2  ;;  %p143_p1 = scmp.ne.s32.totalorder %s1007_s10, %s1003_s9 }
   0x9   : > { %p144_p2 = scmp.eq.s32.totalorder %s1027_s15, 0  ;;  %s136_s19 = sadd.s32 1, %s1007_s10 }
   0xa   : > { %s1295_s0 = smov (%p31_p0, %s30_s0), 0  ;;  %s1297_s4 = smov (!%p31_p0, %s33_s4), %s1023_s14 }
   0xb   : > { %p145_p3 = por %p144_p2, %p143_p1  ;;  %p35_p4 = scmp.ge.s32.totalorder %s1297_s4, 2 }
   0xc   : > { %s131_s16 = ssub.s32 %s1019_s13, %s1295_s0  ;;  %p820_p6 = scmp.ge.s32.totalorder %s1027_s15, 4 }
   0xd   : > { %s1299_s4 = smov (%p35_p4, %s1297_s4), 0 }
   0xe   : > { %1281 = sst [smem:[#allocation7_spill]] %s1299_s4  ;;  %s132_s17 = ssub.s32 %s1023_s14, %s1299_s4 }
   0xf   : > { %s133_s18 = sor.u32 %s132_s17, %s131_s16  ;;  %253 = sbr.rel (%p820_p6) target bundleno = 40 (0x28), region = 24 }
  0x10   : > { %p134_p5 = scmp.eq.s32.totalorder %s133_s18, 0 }
  0x12   : > { %s1135_s20 = scalar_select %p134_p5, %s1007_s10, %s136_s19  }
  0x14   : > { %268 = sbr.rel (!%p145_p3) target bundleno = 40 (0x28), region = 36  ;;  %s270_s21 = sand.u32 (%p145_p3), 1, %s1007_s10  }
  0x15   : > { %s850_s22 = sshll.u32 (%p145_p3), %s1019_s13, 5  ;;  %s821_s23 = sshll.u32 (%p145_p3), %s270_s21, 6 }
  0x16   : > { %s275_s24 = sadd.s32 (%p145_p3), %s1023_s14, %s850_s22  ;;  %s1282_s5 = sld [smem:[#allocation8_spill]] (%p145_p3) }
  0x17   : > { %s824_s25 = sshll.u32 (%p145_p3), %s275_s24, 2  ;;  %s272_s29 = scalar_lea.vmem (%p145_p3), [#allocation6], %s821_s23 }
  0x1c   : > { %s1144_s28 = scalar_lea.vmem %s1282_s5, %s824_s25 }
  0x1d   : > { %v294_v1 = vld [vmem:[%s1144_s28] sm:$0xf]  ;;  %v296_v2 = vld [vmem:[%s1144_s28 + $0x8] sm:$0xf]  ;;  %v298_v3 = vld [vmem:[%s1144_s28 + $0x10] sm:$0xf] }
  0x1e   : > { %295 = vst [vmem:[%s272_s29] sm:$0xf] %v294_v1  ;;  %297 = vst [vmem:[%s272_s29 + $0x4] sm:$0xf] %v296_v2  ;;  %v300_v4 = vld [vmem:[%s1144_s28 + $0x18] sm:$0xf] }
  0x1f   : > { %299 = vst [vmem:[%s272_s29 + $0x8] sm:$0xf] %v298_v3  ;;  %v302_v5 = vld [vmem:[%s1144_s28 + $0x20] sm:$0xf]  ;;  %v304_v6 = vld [vmem:[%s1144_s28 + $0x28] sm:$0xf] }
  0x20   : > { %301 = vst [vmem:[%s272_s29 + $0xc] sm:$0xf] %v300_v4  ;;  %303 = vst [vmem:[%s272_s29 + $0x10] sm:$0xf] %v302_v5  ;;  %v306_v7 = vld [vmem:[%s1144_s28 + $0x30] sm:$0xf] }
  0x21   : > { %305 = vst [vmem:[%s272_s29 + $0x14] sm:$0xf] %v304_v6  ;;  %v308_v8 = vld [vmem:[%s1144_s28 + $0x38] sm:$0xf]  ;;  %v310_v9 = vld [vmem:[%s1144_s28 + $0x40] sm:$0xf] }
  0x22   : > { %307 = vst [vmem:[%s272_s29 + $0x18] sm:$0xf] %v306_v7  ;;  %309 = vst [vmem:[%s272_s29 + $0x1c] sm:$0xf] %v308_v8  ;;  %v312_v10 = vld [vmem:[%s1144_s28 + $0x48] sm:$0xf] }
  0x23   : > { %311 = vst [vmem:[%s272_s29 + $0x20] sm:$0xf] %v310_v9  ;;  %v314_v11 = vld [vmem:[%s1144_s28 + $0x50] sm:$0xf]  ;;  %v316_v12 = vld [vmem:[%s1144_s28 + $0x58] sm:$0xf] }
  0x24   : > { %313 = vst [vmem:[%s272_s29 + $0x24] sm:$0xf] %v312_v10  ;;  %315 = vst [vmem:[%s272_s29 + $0x28] sm:$0xf] %v314_v11  ;;  %v318_v13 = vld [vmem:[%s1144_s28 + $0x60] sm:$0xf] }
  0x25   : > { %317 = vst [vmem:[%s272_s29 + $0x2c] sm:$0xf] %v316_v12  ;;  %v320_v14 = vld [vmem:[%s1144_s28 + $0x68] sm:$0xf]  ;;  %v322_v15 = vld [vmem:[%s1144_s28 + $0x70] sm:$0xf] }
  0x26   : > { %319 = vst [vmem:[%s272_s29 + $0x30] sm:$0xf] %v318_v13  ;;  %321 = vst [vmem:[%s272_s29 + $0x34] sm:$0xf] %v320_v14  ;;  %v324_v16 = vld [vmem:[%s1144_s28 + $0x78] sm:$0xf] }
  0x27   : > { %323 = vst [vmem:[%s272_s29 + $0x38] sm:$0xf] %v322_v15  ;;  %325 = vst [vmem:[%s272_s29 + $0x3c] sm:$0xf] %v324_v16 }
  0x28 PF: > { %p825_p7 = scmp.ge.s32.totalorder %s1027_s15, 1  ;;  %p394_p8 = scmp.lt.s32.totalorder %s1027_s15, 5 }
  0x2a   : > { %p395_p9 = pnand %p825_p7, %p394_p8 }
  0x2b   : > { %s401_s30 = sand.u32 (!%p395_p9), 1, %s1003_s9   ;;  %p446_p10 = scmp.lt.s32.totalorder (!%p395_p9), %s1011_s11, 1 }
  0x2c   : > { %398 = sbr.rel (%p395_p9) target bundleno = 404 (0x194), region = 85  ;;  %s826_s16 = sshll.u32 (!%p395_p9), %s401_s30, 6 }
  0x2d   : > { %p453_p11 = scmp.lt.s32.totalorder (!%p395_p9), %s1015_s12, 1  ;;  %s1196_s19 = scalar_lea.vmem (!%p395_p9), [#allocation6], %s826_s16 }
  0x2e   : > { %p831_p12 = scmp.ne.s32.totalorder (!%p395_p9), %s1011_s11, 0 }
  0x31   : > { %s1168_s17 = scalar_select %p446_p10, %s1011_s11, 1 }
  0x32   : > { %s1301_s12 = smov (!%p453_p11, %s1015_s12), 1  ;;  %470 = sbr.rel (%p831_p12) target bundleno = 57 (0x39), region = 93 }
  0x33   : > { %s448_s21 = scalar_lea.vmem %s1272_s2, %s1168_s17  ;;  %s451_s24 = scalar_lea.vmem %s1273_s3, %s1168_s17 }
  0x34   : > { %s455_s26 = scalar_lea.vmem %s1276_s6, %s1301_s12  ;;  %s851_s27 = sshll.u32 %s1301_s12, 3 }
  0x35   : > { %s1189_s30 = scalar_lea.vmem %s1277_s7, %s851_s27  ;;  %s1194_s18 = scalar_lea.vmem %s1278_s8, %s851_s27 }
  0x37   : > { %v1029_v17 = vmov 0.0  }
  0x38   : > { %471 = vst [vmem:[#allocation2] sm:$0xff] %v1029_v17  ;;  %472 = vst [vmem:[#allocation2 + $0x8] sm:$0xff] %v1029_v17 }
  0x39 PF: > { %v835_v18 = vld [vmem:[#allocation5] ss:$0 sm:$0xff]  ;;  %s1199_s22 = sld [smem:[#allocation4]]  ;;  %v1030_v19 = vmov 0   ;;  %v1031_v21 = vmov 0.0   ;;  %v962_v22 = vld [vmem:[%s1196_s19 + $0x30] sm:$0xff]   ;;  %v485_v31 = vlaneseq }
  0x3a   : > { %960 = vset.pattern.permute.xlu0 %v1030_v19  ;;  %v961_v20 = vld [vmem:[%s1196_s19 + $0x38] sm:$0xff]   ;;  %878 = vmatprep.subr.bf16.mxu0 %v1031_v21  ;;  %vm1032_vm0 = vmmov 0   ;;  %v963_v23 = vld [vmem:[%s1196_s19 + $0x28] sm:$0xff]   ;;  %v964_v25 = vld [vmem:[%s1196_s19 + $0x20] sm:$0xff]   ;;  %s853_s4 = sshll.u32 %s1011_s11, 3  ;;  %p844_p13 = scmp.ne.s32.totalorder %s1011_s11, 1 }
  0x3b   : > { %550 = vperm.xlu0 %960, %v835_v18   ;;  %879 = vmatpush3.bf16.msra.mxu0 %v961_v20  ;;  %v965_v26 = vld [vmem:[%s1196_s19 + $0x18] sm:$0xff]   ;;  %v966_v27 = vld [vmem:[%s1196_s19 + $0x10] sm:$0xff]   ;;  %v967_v29 = vld [vmem:[%s1196_s19 + $0x8] sm:$0xff]   ;;  %v486_v32 = vshrl.u32 %v485_v31, 7  ;;  %s475_s9 = scalar_lea.vmem %s1271_s1, %s853_s4 }
  0x3c   : > { %880 = vmatprep.subr.bf16.mxu0 %v1031_v21  ;;  %894 = vmatprep.mubr.msk.bf16.mxu0 %vm1032_vm0, %v1031_v21  ;;  %v968_v30 = vld [vmem:[%s1196_s19] sm:$0xff]   ;;  %v857_v33 = vld [vmem:[%s475_s9] sm:$0xff]  }
  0x3d   : > { %v487_v34 = vadd.s32 8, %v486_v32  ;;  %v858_v36 = vunpack.c.l.bf16 %v857_v33  ;;  %v859_v37 = vunpack.c.h.bf16 %v857_v33  ;;  %v520_v2 = vld [vmem:[%s448_s21] sm:$0x1]  ;;  %v527_v3 = vsub.s32 0, %v486_v32 }
  0x3e   : > { %v834_v9 = vld [vmem:[%s451_s24] ss:$0 sm:$0xff] }
  0x3f   : > { %s481_s5 = scvt.s32.f32 %s1199_s22  ;;  %881 = vmatpush3.bf16.msra.mxu0 %v962_v22  ;;  %v488_v35 = vstv %s1199_s22  ;;  %v557_v18 = vld [vmem:[#allocation2] sm:$0xff]  ;;  %v558_v22 = vld [vmem:[#allocation2 + $0x8] sm:$0xff] }
  0x40   : > { %882 = vmatprep.subr.bf16.mxu0 %v1031_v21  ;;  %vm1215_vm1 = vcmp.lt.s32.totalorder %v486_v32, %v488_v35  ;;  %vm1219_vm2 = vcmp.lt.s32.totalorder %v487_v34, %v488_v35 }
  0x41   : > { %v482_v24 = vstv %s481_s5  ;;  %v495_v40 = vsel %vm1215_vm1, %v858_v36, 0.0  ;;  %v496_v41 = vsel %vm1219_vm2, %v859_v37, 0.0 }
  0x42   : > { %969 = vrcp.f32 %v482_v24  ;;  %v497_v42 = vadd.f32 %v496_v41, %v495_v40 }
  0x43   : > { %883 = vmatpush3.bf16.msra.mxu0 %v963_v23 }
  0x44   : > { %884 = vmatprep.subr.bf16.mxu0 %v1031_v21  ;;  %v498_v43 = vrot.slane %v497_v42, 4 }
  0x46   : > { %v499_v44 = vadd.f32 %v498_v43, %v497_v42 }
  0x47   : > { %885 = vmatpush3.bf16.msra.mxu0 %v964_v25 }
  0x48   : > { %886 = vmatprep.subr.bf16.mxu0 %v1031_v21  ;;  %v500_v45 = vrot.slane %v499_v44, 2 }
  0x4a   : > { %v501_v46 = vadd.f32 %v500_v45, %v499_v44 }
  0x4b   : > { %887 = vmatpush3.bf16.msra.mxu0 %v965_v26 }
  0x4c   : > { %888 = vmatprep.subr.bf16.mxu0 %v1031_v21  ;;  %v502_v47 = vrot.slane %v501_v46, 1 }
  0x4e   : > { %v503_v48 = vadd.f32 %v502_v47, %v501_v46 }
  0x4f   : > { %v970_v28 = vpop.eup %969  ;;  %889 = vmatpush3.bf16.msra.mxu0 %v966_v27 }
  0x50   : > { %898 = vpush %v970_v28  ;;  %890 = vmatprep.subr.bf16.mxu0 %v1031_v21 }
  0x53   : > { %891 = vmatpush3.bf16.msra.mxu0 %v967_v29 }
  0x54   : > { %892 = vmatprep.subr.bf16.mxu0 %v1031_v21 }
  0x57   : > { %893 = vmatpush3.bf16.msra.mxu0 %v968_v30 }
  0x81   : > { %s899_s25 = spop %898 }
  0x82   : > { %v504_v49 = vstv %s899_s25 }
  0x83   : > { %v505_v50 = vmul.f32 %v504_v49, %v503_v48 }
  0x85   : > { %v506_v51 = vsub.f32 %v858_v36, %v505_v50  ;;  %v507_v52 = vsub.f32 %v859_v37, %v505_v50 }
  0x87   : > { %v508_v53 = vsel %vm1215_vm1, %v506_v51, 0.0  ;;  %v509_v54 = vsel %vm1219_vm2, %v507_v52, 0.0 }
  0x88   : > { %v510_v55 = vmul.f32 %v508_v53, %v508_v53  ;;  %v511_v56 = vmul.f32 %v509_v54, %v509_v54 }
  0x8a   : > { %v512_v57 = vadd.f32 %v511_v56, %v510_v55 }
  0x8c   : > { %v513_v58 = vrot.slane %v512_v57, 4 }
  0x8e   : > { %v514_v59 = vadd.f32 %v513_v58, %v512_v57 }
  0x90   : > { %v515_v60 = vrot.slane %v514_v59, 2 }
  0x92   : > { %v516_v61 = vadd.f32 %v515_v60, %v514_v59 }
  0x94   : > { %v517_v62 = vrot.slane %v516_v61, 1 }
  0x96   : > { %v518_v63 = vadd.f32 %v517_v62, %v516_v61 }
  0x98   : > { %v519_v0 = vmul.f32 %v518_v63, %v504_v49 }
  0x9a   : > { %v521_v1 = vadd.f32 1e-05, %v519_v0 }
  0x9c   : > { %971 = vrsqrt.f32 %v521_v1 }
  0xa9   : > { %v972_v4 = vpop.eup %971 }
  0xaa   : > { %v523_v5 = vmul.f32 %v972_v4, %v520_v2 }
  0xac   : > { %v528_v6 = vrot.slane %v523_v5, %v527_v3 }
  0xae   : > { %v530_v7 = vmul.f32 %v528_v6, %v508_v53  ;;  %v531_v8 = vmul.f32 %v528_v6, %v509_v54 }
  0xb0   : > { %v539_v10 = vadd.f32 %v834_v9, %v530_v7  ;;  %v540_v11 = vadd.f32 %v834_v9, %v531_v8 }
  0xb2   : > { %vm541_vm3 = vcmp.ge.f32.partialorder %v539_v10, 0.0  ;;  %vm542_vm4 = vcmp.ge.f32.partialorder %v540_v11, 0.0 }
  0xb6   : > { %v551_v12 = vpop.permute.xlu0 %550 }
  0xb7   : > { %v553_v13 = vmul.f32 %v551_v12, %v539_v10  ;;  %v554_v14 = vmul.f32 %v551_v12, %v540_v11 }
  0xb9   : > { %v555_v15 = vsel %vm541_vm3, %v539_v10, %v553_v13  ;;  %v556_v16 = vsel %vm542_vm4, %v540_v11, %v554_v14 }
  0xba   : > { %v559_v17 = vpack.c.bf16 %v556_v16, %v555_v15 }
  0xbc   : > { %895 = vmatmul.mubr.bf16.vlgmr.msra.gmra.mxu0 %v559_v17 }
 0x17c   : > { %v658_v19 = vpop.f32.mrf.mxu0 }
 0x17d   : > { %v665_v20 = vadd.f32 %v658_v19, %v557_v18 }
 0x17e   : > { %v896_v21 = vpop.f32.mrf.mxu0 }
 0x17f   : > { %667 = vst [vmem:[#allocation2] sm:$0xff] %v665_v20  ;;  %672 = sbr.rel (%p844_p13) target bundleno = 404 (0x194), region = 97 }
 0x180   : > { %v661_v23 = vpop.f32.mrf.mxu0 }
 0x181   : > { %v666_v24 = vadd.f32 %v661_v23, %v558_v22 }
 0x182   : > { %v897_v25 = vpop.f32.mrf.mxu0 }
 0x183   : > { %668 = vst [vmem:[#allocation2 + $0x8] sm:$0xff] %v666_v24 }
 0x184   : > { %v845_v28 = vld [vmem:[%s455_s26] ss:$0 sm:$0xff] }
 0x185   : > { %v861_v31 = vld [vmem:[%s1189_s30] sm:$0xff]  }
 0x186   : > { %v673_v26 = vld [vmem:[#allocation2] sm:$0xff]  ;;  %v862_v32 = vunpack.c.l.bf16 %v861_v31  ;;  %v863_v33 = vunpack.c.h.bf16 %v861_v31 }
 0x187   : > { %v682_v29 = vadd.f32 %v845_v28, %v673_v26 }
 0x189   : > { %v688_v34 = vadd.f32 %v862_v32, %v682_v29 }
 0x18a   : > { %v674_v27 = vld [vmem:[#allocation2 + $0x8] sm:$0xff] }
 0x18b   : > { %v683_v30 = vadd.f32 %v845_v28, %v674_v27  ;;  %v690_v36 = vmul.f32 0.5, %v688_v34 }
 0x18d   : > { %v689_v35 = vadd.f32 %v863_v33, %v683_v30 }
 0x18f   : > { %v691_v37 = vmul.f32 0.5, %v689_v35 }
 0x191   : > { %v867_v38 = vpack.c.bf16 %v691_v37, %v690_v36 }
 0x193   : > { %868 = vst [vmem:[%s1194_s18] sm:$0xff] %v867_v38  }
 0x194 PF: > { %s21_s15 = sadd.s32 1, %s1027_s15   ;;  %s1287_s24 = sld [smem:[#allocation7_spill]] }
 0x195   : > { %p18_p0 = scmp.ge.s32.totalorder %s21_s15, 6   ;;  %s1288_s9 = smov %s1007_s10 }
 0x196   : > { %s1289_s10 = smov %s1135_s20  ;;  %s1290_s11 = smov %s1019_s13 }
 0x197   : > { %s1291_s12 = smov %s1023_s14  ;;  %s1292_s13 = smov %s1295_s0 }
 0x198   :  { %20 = sbr.rel (!%p18_p0) target bundleno = 7 (0x7), region = 145 }
 0x19a   : > { %s1293_s14 = smov %s1287_s24 }

// kernel: linear_block.6
= control target key start
LH: loop header
LB: loop body
LE: loop exit
PB: predicated region body
PF: predicated region fallthrough
CT: control target
= control target key end

     0   :  { %s1185_s0 = inlined_call_operand.<no memory space> [shape: s32[1], index: 0, kind: input, shape index: {}]   ;;  %s1186_s1 = inlined_call_operand.vmem [shape: bf16[2,16,128], index: 1, kind: input, shape index: {}]   ;;  %s1187_s2 = inlined_call_operand.vmem [shape: f32[1,256], index: 2, kind: input, shape index: {}]   ;;  %s1188_s3 = inlined_call_operand.vmem [shape: f32[1,256], index: 3, kind: input, shape index: {}]   ;;  %s1189_s4 = inlined_call_operand.<no memory space> [shape: f32[1,1], index: 4, kind: input, shape index: {}]   ;;  %s1190_s5 = inlined_call_operand.vmem [shape: bf16[256,256], index: 5, kind: input, shape index: {}]   ;;  %s1191_s6 = inlined_call_operand.vmem [shape: f32[1,256], index: 6, kind: input, shape index: {}]   ;;  %s1192_s7 = inlined_call_operand.vmem [shape: bf16[2,16,128], index: 7, kind: output, shape index: {}]  }
   0x1   :  { %12 = sst [smem:[#allocation4]] %s1185_s0  ;;  %v13_v0 = vstv %s1189_s4 }
   0x2   :  { %14 = vst [vmem:[#allocation5] sm:$0x1] %v13_v0 }
   0x3   :  { %s1005_s28 = smov 0   ;;  %s1007_s29 = smov 0  }
   0x4   :  { %s1009_s30 = smov 0   ;;  %s1011_s8 = smov 0  }
   0x5   :  { %s1013_s9 = smov 0   ;;  %s1015_s10 = smov 0  }
   0x6   :  { %s1017_s11 = smov 0  }
   0x7 LB: > { %s29_s0 = sadd.s32 1, %s945_s9  ;;  %s32_s4 = sadd.s32 1, %s949_s10  ;;  %s953_s11 = sphi %s1017_s11, %s20_s11   ;;  %s949_s10 = sphi %s1015_s10, %s1202_s10   ;;  %s945_s9 = sphi %s1013_s9, %s1201_s9   ;;  %s941_s8 = sphi %s1011_s8, %s1200_s8   ;;  %s937_s30 = sphi %s1009_s30, %s1199_s30   ;;  %s933_s29 = sphi %s1007_s29, %s1198_s29   ;;  %s929_s28 = sphi %s1005_s28, %s1197_s28  }
   0x8   : > { %p30_p0 = scmp.ge.s32.totalorder %s29_s0, 2  ;;  %p142_p1 = scmp.ne.s32.totalorder %s933_s29, %s929_s28 }
   0x9   : > { %p143_p2 = scmp.eq.s32.totalorder %s953_s11, 0  ;;  %s135_s15 = sadd.s32 1, %s933_s29 }
   0xa   : > { %s1204_s0 = smov (%p30_p0, %s29_s0), 0  ;;  %s1206_s4 = smov (!%p30_p0, %s32_s4), %s949_s10 }
   0xb   : > { %p144_p3 = por %p143_p2, %p142_p1  ;;  %p34_p4 = scmp.ge.s32.totalorder %s1206_s4, 2 }
   0xc   : > { %s130_s12 = ssub.s32 %s945_s9, %s1204_s0  ;;  %p753_p6 = scmp.ge.s32.totalorder %s953_s11, 4 }
   0xd   : > { %s1208_s4 = smov (%p34_p4, %s1206_s4), 0 }
   0xe   : > { %s131_s13 = ssub.s32 %s949_s10, %s1208_s4  ;;  %226 = sbr.rel (%p753_p6) target bundleno = 35 (0x23), region = 24 }
   0xf   : > { %s132_s14 = sor.u32 %s131_s13, %s130_s12 }
  0x10   : > { %p133_p5 = scmp.eq.s32.totalorder %s132_s14, 0 }
  0x12   : > { %s1056_s16 = scalar_select %p133_p5, %s933_s29, %s135_s15  }
  0x13   : > { %241 = sbr.rel (!%p144_p3) target bundleno = 35 (0x23), region = 36  ;;  %s243_s17 = sand.u32 (%p144_p3), 1, %s933_s29  }
  0x14   : > { %s781_s18 = sshll.u32 (%p144_p3), %s945_s9, 5  ;;  %s754_s19 = sshll.u32 (%p144_p3), %s243_s17, 6 }
  0x15   : > { %s248_s20 = sadd.s32 (%p144_p3), %s949_s10, %s781_s18  ;;  %s245_s25 = scalar_lea.vmem (%p144_p3), [#allocation6], %s754_s19 }
  0x16   : > { %s757_s21 = sshll.u32 (%p144_p3), %s248_s20, 2 }
  0x17   : > { %s1065_s24 = scalar_lea.vmem (%p144_p3), %s1190_s5, %s757_s21 }
  0x18   : > { %v267_v1 = vld [vmem:[%s1065_s24] sm:$0xf]  ;;  %v269_v2 = vld [vmem:[%s1065_s24 + $0x8] sm:$0xf]  ;;  %v271_v3 = vld [vmem:[%s1065_s24 + $0x10] sm:$0xf] }
  0x19   : > { %268 = vst [vmem:[%s245_s25] sm:$0xf] %v267_v1  ;;  %270 = vst [vmem:[%s245_s25 + $0x4] sm:$0xf] %v269_v2  ;;  %v273_v4 = vld [vmem:[%s1065_s24 + $0x18] sm:$0xf] }
  0x1a   : > { %272 = vst [vmem:[%s245_s25 + $0x8] sm:$0xf] %v271_v3  ;;  %v275_v5 = vld [vmem:[%s1065_s24 + $0x20] sm:$0xf]  ;;  %v277_v6 = vld [vmem:[%s1065_s24 + $0x28] sm:$0xf] }
  0x1b   : > { %274 = vst [vmem:[%s245_s25 + $0xc] sm:$0xf] %v273_v4  ;;  %276 = vst [vmem:[%s245_s25 + $0x10] sm:$0xf] %v275_v5  ;;  %v279_v7 = vld [vmem:[%s1065_s24 + $0x30] sm:$0xf] }
  0x1c   : > { %278 = vst [vmem:[%s245_s25 + $0x14] sm:$0xf] %v277_v6  ;;  %v281_v8 = vld [vmem:[%s1065_s24 + $0x38] sm:$0xf]  ;;  %v283_v9 = vld [vmem:[%s1065_s24 + $0x40] sm:$0xf] }
  0x1d   : > { %280 = vst [vmem:[%s245_s25 + $0x18] sm:$0xf] %v279_v7  ;;  %282 = vst [vmem:[%s245_s25 + $0x1c] sm:$0xf] %v281_v8  ;;  %v285_v10 = vld [vmem:[%s1065_s24 + $0x48] sm:$0xf] }
  0x1e   : > { %284 = vst [vmem:[%s245_s25 + $0x20] sm:$0xf] %v283_v9  ;;  %v287_v11 = vld [vmem:[%s1065_s24 + $0x50] sm:$0xf]  ;;  %v289_v12 = vld [vmem:[%s1065_s24 + $0x58] sm:$0xf] }
  0x1f   : > { %286 = vst [vmem:[%s245_s25 + $0x24] sm:$0xf] %v285_v10  ;;  %288 = vst [vmem:[%s245_s25 + $0x28] sm:$0xf] %v287_v11  ;;  %v291_v13 = vld [vmem:[%s1065_s24 + $0x60] sm:$0xf] }
  0x20   : > { %290 = vst [vmem:[%s245_s25 + $0x2c] sm:$0xf] %v289_v12  ;;  %v293_v14 = vld [vmem:[%s1065_s24 + $0x68] sm:$0xf]  ;;  %v295_v15 = vld [vmem:[%s1065_s24 + $0x70] sm:$0xf] }
  0x21   : > { %292 = vst [vmem:[%s245_s25 + $0x30] sm:$0xf] %v291_v13  ;;  %294 = vst [vmem:[%s245_s25 + $0x34] sm:$0xf] %v293_v14  ;;  %v297_v16 = vld [vmem:[%s1065_s24 + $0x78] sm:$0xf] }
  0x22   : > { %296 = vst [vmem:[%s245_s25 + $0x38] sm:$0xf] %v295_v15  ;;  %298 = vst [vmem:[%s245_s25 + $0x3c] sm:$0xf] %v297_v16 }
  0x23 PF: > { %p758_p7 = scmp.ge.s32.totalorder %s953_s11, 1  ;;  %p359_p8 = scmp.lt.s32.totalorder %s953_s11, 5 }
  0x25   : > { %p360_p9 = pnand %p758_p7, %p359_p8 }
  0x26   : > { %s366_s26 = sand.u32 (!%p360_p9), 1, %s929_s28   ;;  %p404_p10 = scmp.lt.s32.totalorder (!%p360_p9), %s937_s30, 1 }
  0x27   : > { %363 = sbr.rel (%p360_p9) target bundleno = 395 (0x18b), region = 81  ;;  %s759_s27 = sshll.u32 (!%p360_p9), %s366_s26, 6 }
  0x28   : > { %p411_p11 = scmp.lt.s32.totalorder (!%p360_p9), %s941_s8, 1  ;;  %s1112_s26 = scalar_lea.vmem (!%p360_p9), [#allocation6], %s759_s27 }
  0x29   : > { %p762_p12 = scmp.ne.s32.totalorder (!%p360_p9), %s937_s30, 0 }
  0x2c   : > { %s1089_s12 = scalar_select %p404_p10, %s937_s30, 1 }
  0x2d   : > { %s1210_s8 = smov (!%p411_p11, %s941_s8), 1  ;;  %423 = sbr.rel (%p762_p12) target bundleno = 52 (0x34), region = 89 }
  0x2e   : > { %s406_s15 = scalar_lea.vmem %s1187_s2, %s1089_s12  ;;  %s409_s19 = scalar_lea.vmem %s1188_s3, %s1089_s12 }
  0x2f   : > { %s413_s21 = scalar_lea.vmem %s1191_s6, %s1210_s8  ;;  %s782_s22 = sshll.u32 %s1210_s8, 3 }
  0x30   : > { %s1110_s25 = scalar_lea.vmem %s1192_s7, %s782_s22 }
  0x32   : > { %v955_v17 = vmov 0.0  }
  0x33   : > { %424 = vst [vmem:[#allocation2] sm:$0xff] %v955_v17  ;;  %425 = vst [vmem:[#allocation2 + $0x8] sm:$0xff] %v955_v17 }
  0x34 PF: > { %v766_v18 = vld [vmem:[#allocation5] ss:$0 sm:$0xff]  ;;  %s1115_s13 = sld [smem:[#allocation4]]  ;;  %v956_v19 = vmov 0   ;;  %v957_v21 = vmov 0.0   ;;  %v888_v22 = vld [vmem:[%s1112_s26 + $0x30] sm:$0xff]   ;;  %v438_v31 = vlaneseq }
  0x35   : > { %886 = vset.pattern.permute.xlu0 %v956_v19  ;;  %v887_v20 = vld [vmem:[%s1112_s26 + $0x38] sm:$0xff]   ;;  %804 = vmatprep.subr.bf16.mxu0 %v957_v21  ;;  %vm958_vm0 = vmmov 0   ;;  %v889_v23 = vld [vmem:[%s1112_s26 + $0x28] sm:$0xff]   ;;  %v890_v25 = vld [vmem:[%s1112_s26 + $0x20] sm:$0xff]   ;;  %s783_s14 = sshll.u32 %s937_s30, 3  ;;  %p775_p13 = scmp.ne.s32.totalorder %s937_s30, 1 }
  0x36   : > { %503 = vperm.xlu0 %886, %v766_v18   ;;  %805 = vmatpush3.bf16.msra.mxu0 %v887_v20  ;;  %v891_v26 = vld [vmem:[%s1112_s26 + $0x18] sm:$0xff]   ;;  %v892_v27 = vld [vmem:[%s1112_s26 + $0x10] sm:$0xff]   ;;  %v893_v29 = vld [vmem:[%s1112_s26 + $0x8] sm:$0xff]   ;;  %v439_v32 = vshrl.u32 %v438_v31, 7  ;;  %s428_s28 = scalar_lea.vmem %s1186_s1, %s783_s14 }
  0x37   : > { %806 = vmatprep.subr.bf16.mxu0 %v957_v21  ;;  %820 = vmatprep.mubr.msk.bf16.mxu0 %vm958_vm0, %v957_v21  ;;  %v894_v30 = vld [vmem:[%s1112_s26] sm:$0xff]   ;;  %v787_v33 = vld [vmem:[%s428_s28] sm:$0xff]  }
  0x38   : > { %v440_v34 = vadd.s32 8, %v439_v32  ;;  %v788_v36 = vunpack.c.l.bf16 %v787_v33  ;;  %v789_v37 = vunpack.c.h.bf16 %v787_v33  ;;  %v473_v2 = vld [vmem:[%s406_s15] sm:$0x1]  ;;  %v480_v3 = vsub.s32 0, %v439_v32 }
  0x39   : > { %v765_v9 = vld [vmem:[%s409_s19] ss:$0 sm:$0xff] }
  0x3a   : > { %s434_s27 = scvt.s32.f32 %s1115_s13  ;;  %807 = vmatpush3.bf16.msra.mxu0 %v888_v22  ;;  %v441_v35 = vstv %s1115_s13  ;;  %v510_v18 = vld [vmem:[#allocation2] sm:$0xff]  ;;  %v511_v22 = vld [vmem:[#allocation2 + $0x8] sm:$0xff] }
  0x3b   : > { %808 = vmatprep.subr.bf16.mxu0 %v957_v21  ;;  %vm1131_vm1 = vcmp.lt.s32.totalorder %v439_v32, %v441_v35  ;;  %vm1135_vm2 = vcmp.lt.s32.totalorder %v440_v34, %v441_v35 }
  0x3c   : > { %v435_v24 = vstv %s434_s27  ;;  %v448_v40 = vsel %vm1131_vm1, %v788_v36, 0.0  ;;  %v449_v41 = vsel %vm1135_vm2, %v789_v37, 0.0 }
  0x3d   : > { %895 = vrcp.f32 %v435_v24  ;;  %v450_v42 = vadd.f32 %v449_v41, %v448_v40 }
  0x3e   : > { %809 = vmatpush3.bf16.msra.mxu0 %v889_v23 }
  0x3f   : > { %810 = vmatprep.subr.bf16.mxu0 %v957_v21  ;;  %v451_v43 = vrot.slane %v450_v42, 4 }
  0x41   : > { %v452_v44 = vadd.f32 %v451_v43, %v450_v42 }
  0x42   : > { %811 = vmatpush3.bf16.msra.mxu0 %v890_v25 }
  0x43   : > { %812 = vmatprep.subr.bf16.mxu0 %v957_v21  ;;  %v453_v45 = vrot.slane %v452_v44, 2 }
  0x45   : > { %v454_v46 = vadd.f32 %v453_v45, %v452_v44 }
  0x46   : > { %813 = vmatpush3.bf16.msra.mxu0 %v891_v26 }
  0x47   : > { %814 = vmatprep.subr.bf16.mxu0 %v957_v21  ;;  %v455_v47 = vrot.slane %v454_v46, 1 }
  0x49   : > { %v456_v48 = vadd.f32 %v455_v47, %v454_v46 }
  0x4a   : > { %v896_v28 = vpop.eup %895  ;;  %815 = vmatpush3.bf16.msra.mxu0 %v892_v27 }
  0x4b   : > { %824 = vpush %v896_v28  ;;  %816 = vmatprep.subr.bf16.mxu0 %v957_v21 }
  0x4e   : > { %817 = vmatpush3.bf16.msra.mxu0 %v893_v29 }
  0x4f   : > { %818 = vmatprep.subr.bf16.mxu0 %v957_v21 }
  0x52   : > { %819 = vmatpush3.bf16.msra.mxu0 %v894_v30 }
  0x7c   : > { %s825_s20 = spop %824 }
  0x7d   : > { %v457_v49 = vstv %s825_s20 }
  0x7e   : > { %v458_v50 = vmul.f32 %v457_v49, %v456_v48 }
  0x80   : > { %v459_v51 = vsub.f32 %v788_v36, %v458_v50  ;;  %v460_v52 = vsub.f32 %v789_v37, %v458_v50 }
  0x82   : > { %v461_v53 = vsel %vm1131_vm1, %v459_v51, 0.0  ;;  %v462_v54 = vsel %vm1135_vm2, %v460_v52, 0.0 }
  0x83   : > { %v463_v55 = vmul.f32 %v461_v53, %v461_v53  ;;  %v464_v56 = vmul.f32 %v462_v54, %v462_v54 }
  0x85   : > { %v465_v57 = vadd.f32 %v464_v56, %v463_v55 }
  0x87   : > { %v466_v58 = vrot.slane %v465_v57, 4 }
  0x89   : > { %v467_v59 = vadd.f32 %v466_v58, %v465_v57 }
  0x8b   : > { %v468_v60 = vrot.slane %v467_v59, 2 }
  0x8d   : > { %v469_v61 = vadd.f32 %v468_v60, %v467_v59 }
  0x8f   : > { %v470_v62 = vrot.slane %v469_v61, 1 }
  0x91   : > { %v471_v63 = vadd.f32 %v470_v62, %v469_v61 }
  0x93   : > { %v472_v0 = vmul.f32 %v471_v63, %v457_v49 }
  0x95   : > { %v474_v1 = vadd.f32 1e-05, %v472_v0 }
  0x97   : > { %897 = vrsqrt.f32 %v474_v1 }
  0xa4   : > { %v898_v4 = vpop.eup %897 }
  0xa5   : > { %v476_v5 = vmul.f32 %v898_v4, %v473_v2 }
  0xa7   : > { %v481_v6 = vrot.slane %v476_v5, %v480_v3 }
  0xa9   : > { %v483_v7 = vmul.f32 %v481_v6, %v461_v53  ;;  %v484_v8 = vmul.f32 %v481_v6, %v462_v54 }
  0xab   : > { %v492_v10 = vadd.f32 %v765_v9, %v483_v7  ;;  %v493_v11 = vadd.f32 %v765_v9, %v484_v8 }
  0xad   : > { %vm494_vm3 = vcmp.ge.f32.partialorder %v492_v10, 0.0  ;;  %vm495_vm4 = vcmp.ge.f32.partialorder %v493_v11, 0.0 }
  0xb1   : > { %v504_v12 = vpop.permute.xlu0 %503 }
  0xb2   : > { %v506_v13 = vmul.f32 %v504_v12, %v492_v10  ;;  %v507_v14 = vmul.f32 %v504_v12, %v493_v11 }
  0xb4   : > { %v508_v15 = vsel %vm494_vm3, %v492_v10, %v506_v13  ;;  %v509_v16 = vsel %vm495_vm4, %v493_v11, %v507_v14 }
  0xb5   : > { %v512_v17 = vpack.c.bf16 %v509_v16, %v508_v15 }
  0xb7   : > { %821 = vmatmul.mubr.bf16.vlgmr.msra.gmra.mxu0 %v512_v17 }
 0x177   : > { %v611_v19 = vpop.f32.mrf.mxu0 }
 0x178   : > { %v618_v20 = vadd.f32 %v611_v19, %v510_v18 }
 0x179   : > { %v822_v21 = vpop.f32.mrf.mxu0 }
 0x17a   : > { %620 = vst [vmem:[#allocation2] sm:$0xff] %v618_v20  ;;  %625 = sbr.rel (%p775_p13) target bundleno = 395 (0x18b), region = 93 }
 0x17b   : > { %v614_v23 = vpop.f32.mrf.mxu0 }
 0x17c   : > { %v619_v24 = vadd.f32 %v614_v23, %v511_v22 }
 0x17d   : > { %v823_v25 = vpop.f32.mrf.mxu0 }
 0x17e   : > { %621 = vst [vmem:[#allocation2 + $0x8] sm:$0xff] %v619_v24 }
 0x17f   : > { %v776_v28 = vld [vmem:[%s413_s21] ss:$0 sm:$0xff] }
 0x181   : > { %v626_v26 = vld [vmem:[#allocation2] sm:$0xff] }
 0x182   : > { %v635_v29 = vadd.f32 %v776_v28, %v626_v26 }
 0x185   : > { %v627_v27 = vld [vmem:[#allocation2 + $0x8] sm:$0xff] }
 0x186   : > { %v636_v30 = vadd.f32 %v776_v28, %v627_v27 }
 0x188   : > { %v793_v31 = vpack.c.bf16 %v636_v30, %v635_v29 }
 0x18a   : > { %794 = vst [vmem:[%s1110_s25] sm:$0xff] %v793_v31  }
 0x18b PF: > { %s20_s11 = sadd.s32 1, %s953_s11   ;;  %s1197_s28 = smov %s933_s29 }
 0x18c   : > { %p17_p0 = scmp.ge.s32.totalorder %s20_s11, 6   ;;  %s1198_s29 = smov %s1056_s16 }
 0x18d   : > { %s1199_s30 = smov %s945_s9  ;;  %s1200_s8 = smov %s949_s10 }
 0x18e   : > { %s1201_s9 = smov %s1204_s0  ;;  %s1202_s10 = smov %s1208_s4 }
 0x18f   :  { %19 = sbr.rel (!%p17_p0) target bundleno = 7 (0x7), region = 138 }

// kernel: linear_block.5
= control target key start
LH: loop header
LB: loop body
LE: loop exit
PB: predicated region body
PF: predicated region fallthrough
CT: control target
= control target key end

     0   :  { %s1027_s0 = inlined_call_operand.<no memory space> [shape: s32[1], index: 0, kind: input, shape index: {}]   ;;  %s1028_s1 = inlined_call_operand.vmem [shape: bf16[1,16,128], index: 1, kind: input, shape index: {}]   ;;  %s1029_s2 = inlined_call_operand.vmem [shape: f32[1,128], index: 2, kind: input, shape index: {}]   ;;  %s1030_s3 = inlined_call_operand.vmem [shape: f32[1,128], index: 3, kind: input, shape index: {}]   ;;  %s1031_s4 = inlined_call_operand.vmem [shape: bf16[128,256], index: 4, kind: input, shape index: {}]   ;;  %s1032_s5 = inlined_call_operand.vmem [shape: f32[1,256], index: 5, kind: input, shape index: {}]   ;;  %s1033_s6 = inlined_call_operand.vmem [shape: bf16[2,16,128], index: 6, kind: output, shape index: {}]  }
   0x1   :  { %11 = sst [smem:[#allocation4]] %s1027_s0 }
   0x2   :  { %s911_s23 = smov 0   ;;  %s913_s24 = smov 0  }
   0x3   :  { %s915_s25 = smov 0   ;;  %s917_s26 = smov 0  }
   0x4   :  { %s919_s27 = smov 0  }
   0x5 LB: > { %s29_s0 = sadd.s32 1, %s865_s26  ;;  %p118_p1 = scmp.ne.s32.totalorder %s857_s24, %s853_s23  ;;  %s869_s27 = sphi %s919_s27, %s17_s27   ;;  %s865_s26 = sphi %s917_s26, %s1041_s26   ;;  %s861_s25 = sphi %s915_s25, %s1040_s25   ;;  %s857_s24 = sphi %s913_s24, %s1039_s24   ;;  %s853_s23 = sphi %s911_s23, %s1038_s23  }
   0x6   : > { %p31_p0 = scmp.ge.s32.totalorder %s29_s0, 2  ;;  %p119_p2 = scmp.eq.s32.totalorder %s869_s27, 0 }
   0x7   : > { %s111_s29 = sadd.s32 1, %s857_s24  ;;  %p713_p5 = scmp.ge.s32.totalorder %s869_s27, 2 }
   0x8   : > { %s1043_s0 = smov (%p31_p0, %s29_s0), 0  ;;  %p120_p3 = por %p119_p2, %p118_p1 }
   0x9   : > { %s107_s28 = ssub.s32 %s865_s26, %s1043_s0  ;;  %211 = sbr.rel (%p713_p5) target bundleno = 28 (0x1c), region = 28 }
   0xa   : > { %p109_p4 = scmp.eq.s32.totalorder %s107_s28, 0 }
   0xc   : > { %s946_s30 = scalar_select %p109_p4, %s857_s24, %s111_s29  }
   0xe   : > { %214 = sbr.rel (!%p120_p3) target bundleno = 28 (0x1c), region = 32  ;;  %s216_s7 = sand.u32 (%p120_p3), 1, %s857_s24  }
   0xf   : > { %s715_s8 = sshll.u32 (%p120_p3), %s865_s26, 2  ;;  %s714_s9 = sshll.u32 (%p120_p3), %s216_s7, 6 }
  0x10   : > { %s954_s12 = scalar_lea.vmem (%p120_p3), %s1031_s4, %s715_s8  ;;  %s218_s13 = scalar_lea.vmem (%p120_p3), [#allocation5], %s714_s9 }
  0x11   : > { %v240_v0 = vld [vmem:[%s954_s12] sm:$0xf] (%p120_p3)  ;;  %v242_v1 = vld [vmem:[%s954_s12 + $0x8] sm:$0xf] (%p120_p3)  ;;  %v244_v2 = vld [vmem:[%s954_s12 + $0x10] sm:$0xf] (%p120_p3) }
  0x12   : > { %241 = vst [vmem:[%s218_s13] sm:$0xf] (%p120_p3), %v240_v0  ;;  %243 = vst [vmem:[%s218_s13 + $0x4] sm:$0xf] (%p120_p3), %v242_v1  ;;  %v246_v3 = vld [vmem:[%s954_s12 + $0x18] sm:$0xf] (%p120_p3) }
  0x13   : > { %v248_v4 = vld [vmem:[%s954_s12 + $0x20] sm:$0xf]  ;;  %245 = vst [vmem:[%s218_s13 + $0x8] sm:$0xf] %v244_v2  ;;  %247 = vst [vmem:[%s218_s13 + $0xc] sm:$0xf] %v246_v3 }
  0x14   : > { %249 = vst [vmem:[%s218_s13 + $0x10] sm:$0xf] %v248_v4  ;;  %v250_v5 = vld [vmem:[%s954_s12 + $0x28] sm:$0xf]  ;;  %v252_v6 = vld [vmem:[%s954_s12 + $0x30] sm:$0xf] }
  0x15   : > { %v254_v7 = vld [vmem:[%s954_s12 + $0x38] sm:$0xf]  ;;  %251 = vst [vmem:[%s218_s13 + $0x14] sm:$0xf] %v250_v5  ;;  %253 = vst [vmem:[%s218_s13 + $0x18] sm:$0xf] %v252_v6 }
  0x16   : > { %255 = vst [vmem:[%s218_s13 + $0x1c] sm:$0xf] %v254_v7  ;;  %v256_v8 = vld [vmem:[%s954_s12 + $0x40] sm:$0xf]  ;;  %v258_v9 = vld [vmem:[%s954_s12 + $0x48] sm:$0xf] }
  0x17   : > { %v260_v10 = vld [vmem:[%s954_s12 + $0x50] sm:$0xf]  ;;  %257 = vst [vmem:[%s218_s13 + $0x20] sm:$0xf] %v256_v8  ;;  %259 = vst [vmem:[%s218_s13 + $0x24] sm:$0xf] %v258_v9 }
  0x18   : > { %261 = vst [vmem:[%s218_s13 + $0x28] sm:$0xf] %v260_v10  ;;  %v262_v11 = vld [vmem:[%s954_s12 + $0x58] sm:$0xf]  ;;  %v264_v12 = vld [vmem:[%s954_s12 + $0x60] sm:$0xf] }
  0x19   : > { %v266_v13 = vld [vmem:[%s954_s12 + $0x68] sm:$0xf]  ;;  %263 = vst [vmem:[%s218_s13 + $0x2c] sm:$0xf] %v262_v11  ;;  %265 = vst [vmem:[%s218_s13 + $0x30] sm:$0xf] %v264_v12 }
  0x1a   : > { %267 = vst [vmem:[%s218_s13 + $0x34] sm:$0xf] %v266_v13  ;;  %v268_v14 = vld [vmem:[%s954_s12 + $0x70] sm:$0xf]  ;;  %v270_v15 = vld [vmem:[%s954_s12 + $0x78] sm:$0xf] }
  0x1b   : > { %269 = vst [vmem:[%s218_s13 + $0x38] sm:$0xf] %v268_v14  ;;  %271 = vst [vmem:[%s218_s13 + $0x3c] sm:$0xf] %v270_v15 }
  0x1c PF: > { %p716_p6 = scmp.ge.s32.totalorder %s869_s27, 1  ;;  %p332_p7 = scmp.lt.s32.totalorder %s869_s27, 3 }
  0x1e   : > { %p333_p8 = pnand %p716_p6, %p332_p7 }
  0x1f   : > { %s974_s14 = sld [smem:[#allocation4]] (!%p333_p8)  ;;  %s339_s15 = sand.u32 (!%p333_p8), 1, %s853_s23  }
  0x20   : > { %336 = sbr.rel (%p333_p8) target bundleno = 356 (0x164), region = 77  ;;  %s717_s16 = sshll.u32 (!%p333_p8), %s339_s15, 6 }
  0x21   : > { %s341_s17 = scalar_lea.vmem (!%p333_p8), [#allocation5], %s717_s16  ;;  %p382_p9 = scmp.lt.s32.totalorder (!%p333_p8), %s861_s25, 1 }
  0x25   : > { %v871_v16 = vmov 0.0   ;;  %vm872_vm0 = vmmov 0   ;;  %v819_v17 = vld [vmem:[%s341_s17 + $0x38] sm:$0xff]   ;;  %s405_s18 = scvt.s32.f32 %s974_s14  ;;  %v820_v18 = vld [vmem:[%s341_s17 + $0x30] sm:$0xff]   ;;  %v821_v20 = vld [vmem:[%s341_s17 + $0x28] sm:$0xff]   ;;  %v409_v26 = vlaneseq  ;;  %v412_v31 = vstv %s974_s14  ;;  %s1045_s25 = smov (!%p382_p9, %s861_s25), 1 }
  0x26   : > { %755 = vmatprep.subr.bf16.mxu0 %v871_v16  ;;  %771 = vmatprep.mubr.msk.bf16.mxu0 %vm872_vm0, %v871_v16  ;;  %v822_v21 = vld [vmem:[%s341_s17 + $0x20] sm:$0xff]   ;;  %v823_v22 = vld [vmem:[%s341_s17 + $0x18] sm:$0xff]   ;;  %v824_v24 = vld [vmem:[%s341_s17 + $0x10] sm:$0xff]   ;;  %s384_s9 = scalar_lea.vmem %s1032_s5, %s1045_s25  ;;  %s734_s10 = sshll.u32 %s1045_s25, 3 }
  0x27   : > { %756 = vmatpush3.bf16.msra.mxu0 %v819_v17  ;;  %v406_v19 = vstv %s405_s18  ;;  %v825_v25 = vld [vmem:[%s341_s17 + $0x8] sm:$0xff]   ;;  %v826_v27 = vld [vmem:[%s341_s17] sm:$0xff]   ;;  %v410_v28 = vshrl.u32 %v409_v26, 7  ;;  %s389_s13 = scalar_lea.vmem %s1033_s6, %s734_s10 }
  0x28   : > { %757 = vmatprep.subr.bf16.mxu0 %v871_v16  ;;  %827 = vrcp.f32 %v406_v19  ;;  %v738_v29 = vld [vmem:[%s1028_s1] sm:$0xff]  }
  0x29   : > { %v411_v30 = vadd.s32 8, %v410_v28  ;;  %v739_v32 = vunpack.c.l.bf16 %v738_v29  ;;  %v740_v33 = vunpack.c.h.bf16 %v738_v29  ;;  %vm982_vm1 = vcmp.lt.s32.totalorder %v410_v28, %v412_v31  ;;  %v444_v62 = vld [vmem:[%s1029_s2] sm:$0x1] }
  0x2a   : > { %v451_v63 = vsub.s32 0, %v410_v28  ;;  %v720_v3 = vld [vmem:[%s1030_s3] ss:$0 sm:$0xff] }
  0x2b   : > { %758 = vmatpush3.bf16.msra.mxu0 %v820_v18  ;;  %vm986_vm2 = vcmp.lt.s32.totalorder %v411_v30, %v412_v31  ;;  %v419_v36 = vsel %vm982_vm1, %v739_v32, 0.0  ;;  %v729_v10 = vld [vmem:[%s384_s9] ss:$0 sm:$0xff] }
  0x2c   : > { %759 = vmatprep.subr.bf16.mxu0 %v871_v16  ;;  %v420_v37 = vsel %vm986_vm2, %v740_v33, 0.0 }
  0x2d   : > { %v421_v38 = vadd.f32 %v420_v37, %v419_v36 }
  0x2f   : > { %760 = vmatpush3.bf16.msra.mxu0 %v821_v20  ;;  %v422_v39 = vrot.slane %v421_v38, 4 }
  0x30   : > { %761 = vmatprep.subr.bf16.mxu0 %v871_v16 }
  0x31   : > { %v423_v40 = vadd.f32 %v422_v39, %v421_v38 }
  0x33   : > { %762 = vmatpush3.bf16.msra.mxu0 %v822_v21  ;;  %v424_v41 = vrot.slane %v423_v40, 2 }
  0x34   : > { %763 = vmatprep.subr.bf16.mxu0 %v871_v16 }
  0x35   : > { %v828_v23 = vpop.eup %827  ;;  %v425_v42 = vadd.f32 %v424_v41, %v423_v40 }
  0x36   : > { %775 = vpush %v828_v23 }
  0x37   : > { %764 = vmatpush3.bf16.msra.mxu0 %v823_v22  ;;  %v426_v43 = vrot.slane %v425_v42, 1 }
  0x38   : > { %765 = vmatprep.subr.bf16.mxu0 %v871_v16 }
  0x39   : > { %v427_v44 = vadd.f32 %v426_v43, %v425_v42 }
  0x3b   : > { %766 = vmatpush3.bf16.msra.mxu0 %v824_v24 }
  0x3c   : > { %767 = vmatprep.subr.bf16.mxu0 %v871_v16 }
  0x3f   : > { %768 = vmatpush3.bf16.msra.mxu0 %v825_v25 }
  0x40   : > { %769 = vmatprep.subr.bf16.mxu0 %v871_v16 }
  0x43   : > { %770 = vmatpush3.bf16.msra.mxu0 %v826_v27 }
  0x67   : > { %s776_s21 = spop %775 }
  0x68   : > { %v428_v45 = vstv %s776_s21 }
  0x69   : > { %v429_v46 = vmul.f32 %v428_v45, %v427_v44 }
  0x6b   : > { %v430_v47 = vsub.f32 %v739_v32, %v429_v46  ;;  %v431_v48 = vsub.f32 %v740_v33, %v429_v46 }
  0x6d   : > { %v432_v49 = vsel %vm982_vm1, %v430_v47, 0.0  ;;  %v433_v50 = vsel %vm986_vm2, %v431_v48, 0.0 }
  0x6e   : > { %v434_v51 = vmul.f32 %v432_v49, %v432_v49  ;;  %v435_v52 = vmul.f32 %v433_v50, %v433_v50 }
  0x70   : > { %v436_v53 = vadd.f32 %v435_v52, %v434_v51 }
  0x72   : > { %v437_v54 = vrot.slane %v436_v53, 4 }
  0x74   : > { %v438_v55 = vadd.f32 %v437_v54, %v436_v53 }
  0x76   : > { %v439_v56 = vrot.slane %v438_v55, 2 }
  0x78   : > { %v440_v57 = vadd.f32 %v439_v56, %v438_v55 }
  0x7a   : > { %v441_v58 = vrot.slane %v440_v57, 1 }
  0x7c   : > { %v442_v59 = vadd.f32 %v441_v58, %v440_v57 }
  0x7e   : > { %v443_v60 = vmul.f32 %v442_v59, %v428_v45 }
  0x80   : > { %v445_v61 = vadd.f32 1e-05, %v443_v60 }
  0x82   : > { %829 = vrsqrt.f32 %v445_v61 }
  0x8f   : > { %v830_v0 = vpop.eup %829 }
  0x90   : > { %v447_v1 = vmul.f32 %v830_v0, %v444_v62 }
  0x92   : > { %v452_v2 = vrot.slane %v447_v1, %v451_v63 }
  0x94   : > { %v454_v4 = vmul.f32 %v452_v2, %v432_v49  ;;  %v455_v5 = vmul.f32 %v452_v2, %v433_v50 }
  0x96   : > { %v463_v6 = vadd.f32 %v720_v3, %v454_v4  ;;  %v464_v7 = vadd.f32 %v720_v3, %v455_v5 }
  0x98   : > { %v467_v8 = vpack.c.bf16 %v464_v7, %v463_v6 }
  0x9a   : > { %772 = vmatmul.mubr.bf16.vlgmr.msra.gmra.mxu0 %v467_v8 }
 0x15a   : > { %v566_v9 = vpop.f32.mrf.mxu0 }
 0x15b   : > { %v589_v13 = vadd.f32 %v729_v10, %v566_v9 }
 0x15c   : > { %v773_v11 = vpop.f32.mrf.mxu0 }
 0x15e   : > { %v569_v12 = vpop.f32.mrf.mxu0 }
 0x15f   : > { %v590_v14 = vadd.f32 %v729_v10, %v569_v12 }
 0x160   : > { %v774_v15 = vpop.f32.mrf.mxu0 }
 0x161   : > { %v744_v16 = vpack.c.bf16 %v590_v14, %v589_v13 }
 0x163   : > { %745 = vst [vmem:[%s389_s13] sm:$0xff] %v744_v16  }
 0x164 PF: > { %s17_s27 = sadd.s32 1, %s869_s27   ;;  %s1038_s23 = smov %s857_s24 }
 0x165   : > { %p14_p10 = scmp.ge.s32.totalorder %s17_s27, 4   ;;  %s1039_s24 = smov %s946_s30 }
 0x166   : > { %s1040_s25 = smov %s865_s26  ;;  %s1041_s26 = smov %s1043_s0 }
 0x167   :  { %16 = sbr.rel (!%p14_p10) target bundleno = 5 (0x5), region = 134 }

// kernel: linear_block.9
= control target key start
LH: loop header
LB: loop body
LE: loop exit
PB: predicated region body
PF: predicated region fallthrough
CT: control target
= control target key end

     0   :  { %s811_s28 = smov 0   ;;  %s813_s29 = smov 0   ;;  %s911_s0 = inlined_call_operand.<no memory space> [shape: s32[1], index: 0, kind: input, shape index: {}]   ;;  %s912_s1 = inlined_call_operand.vmem [shape: bf16[2,16,128], index: 1, kind: input, shape index: {}]   ;;  %s913_s2 = inlined_call_operand.vmem [shape: f32[1,256], index: 2, kind: input, shape index: {}]   ;;  %s914_s3 = inlined_call_operand.vmem [shape: f32[1,256], index: 3, kind: input, shape index: {}]   ;;  %s915_s4 = inlined_call_operand.<no memory space> [shape: f32[1,1], index: 4, kind: input, shape index: {}]   ;;  %s916_s5 = inlined_call_operand.vmem [shape: bf16[256,128], index: 5, kind: input, shape index: {}]   ;;  %s917_s6 = inlined_call_operand.vmem [shape: f32[1,128], index: 6, kind: input, shape index: {}]   ;;  %s918_s7 = inlined_call_operand.vmem [shape: f32[16,128], index: 7, kind: output, shape index: {}]  }
   0x1   :  { %12 = sst [smem:[#allocation4]] %s911_s0  ;;  %v13_v0 = vstv %s915_s4  ;;  %s815_s30 = smov 0  }
   0x2   :  { %14 = vst [vmem:[#allocation5] sm:$0x1] %v13_v0 }
   0x3 LB: > { %s29_s0 = sadd.s32 1, %s755_s29  ;;  %p639_p0 = scmp.ge.s32.totalorder %s759_s30, 1  ;;  %s759_s30 = sphi %s815_s30, %s20_s30   ;;  %s755_s29 = sphi %s813_s29, %s924_s29   ;;  %s751_s28 = sphi %s811_s28, %s923_s28  }
   0x4   : > { %p30_p1 = scmp.ge.s32.totalorder %s29_s0, 2  ;;  %p258_p2 = scmp.lt.s32.totalorder %s759_s30, 3 }
   0x6   : > { %s926_s0 = smov (%p30_p1, %s29_s0), 0  ;;  %p259_p3 = pnand %p639_p0, %p258_p2 }
   0x7   : > { %p299_p4 = scmp.lt.s32.totalorder (!%p259_p3), %s751_s28, 1  ;;  %s640_s4 = sshll.u32 (!%p259_p3), %s751_s28, 4 }
   0x8   : > { %262 = sbr.rel (%p259_p3) target bundleno = 362 (0x16a), region = 44  ;;  %p306_p5 = scmp.lt.s32.totalorder (!%p259_p3), %s640_s4, 31 }
   0x9   : > { %p642_p6 = scmp.ne.s32.totalorder (!%p259_p3), %s751_s28, 0 }
   0xd   : > { %s834_s8 = scalar_select %p299_p4, %s751_s28, 1 }
   0xe   : > { %s928_s4 = smov (!%p306_p5, %s640_s4), 31  ;;  %325 = sbr.rel (%p642_p6) target bundleno = 21 (0x15), region = 48 }
   0xf   : > { %s301_s11 = scalar_lea.vmem %s913_s2, %s834_s8  ;;  %s304_s14 = scalar_lea.vmem %s914_s3, %s834_s8 }
  0x10   : > { %s641_s15 = sshll.u32 %s928_s4, 2 }
  0x11   : > { %s847_s18 = scalar_lea.vmem %s916_s5, %s641_s15 }
  0x13   : > { %v761_v1 = vmov 0.0  }
  0x14   : > { %326 = vst [vmem:[#allocation2] sm:$0xff] %v761_v1  ;;  %327 = vst [vmem:[#allocation2 + $0x8] sm:$0xff] %v761_v1 }
  0x15 PF: > { %v646_v2 = vld [vmem:[#allocation5] ss:$0 sm:$0xff]  ;;  %s850_s19 = sld [smem:[#allocation4]]  ;;  %v762_v3 = vmov 0   ;;  %v725_v4 = vld [vmem:[%s847_s18 + $0x38] sm:$0xff]   ;;  %v763_v5 = vmov 0.0   ;;  %v340_v15 = vlaneseq }
  0x16   : > { %724 = vset.pattern.permute.xlu0 %v762_v3  ;;  %674 = vmatprep.subr.bf16.mxu0 %v763_v5  ;;  %v726_v6 = vld [vmem:[%s847_s18 + $0x30] sm:$0xff]   ;;  %vm764_vm0 = vmmov 0   ;;  %v727_v7 = vld [vmem:[%s847_s18 + $0x28] sm:$0xff]   ;;  %v728_v9 = vld [vmem:[%s847_s18 + $0x20] sm:$0xff]   ;;  %s660_s21 = sshll.u32 %s751_s28, 3  ;;  %p655_p7 = scmp.ne.s32.totalorder %s751_s28, 1 }
  0x17   : > { %405 = vperm.xlu0 %724, %v646_v2   ;;  %675 = vmatpush3.bf16.msra.mxu0 %v725_v4  ;;  %v729_v10 = vld [vmem:[%s847_s18 + $0x18] sm:$0xff]   ;;  %v730_v11 = vld [vmem:[%s847_s18 + $0x10] sm:$0xff]   ;;  %v731_v13 = vld [vmem:[%s847_s18 + $0x8] sm:$0xff]   ;;  %v341_v16 = vshrl.u32 %v340_v15, 7  ;;  %s330_s24 = scalar_lea.vmem %s912_s1, %s660_s21 }
  0x18   : > { %676 = vmatprep.subr.bf16.mxu0 %v763_v5  ;;  %690 = vmatprep.mubr.msk.bf16.mxu0 %vm764_vm0, %v763_v5  ;;  %v732_v14 = vld [vmem:[%s847_s18] sm:$0xff]  }
  0x19   : > { %v662_v17 = vld [vmem:[%s330_s24] sm:$0xff]   ;;  %v342_v18 = vadd.s32 8, %v341_v16  ;;  %v382_v51 = vsub.s32 0, %v341_v16 }
  0x1a   : > { %v663_v20 = vunpack.c.l.bf16 %v662_v17  ;;  %v664_v21 = vunpack.c.h.bf16 %v662_v17  ;;  %v375_v50 = vld [vmem:[%s301_s11] sm:$0x1] }
  0x1b   : > { %s336_s20 = scvt.s32.f32 %s850_s19  ;;  %677 = vmatpush3.bf16.msra.mxu0 %v726_v6  ;;  %v343_v19 = vstv %s850_s19  ;;  %v645_v57 = vld [vmem:[%s304_s14] ss:$0 sm:$0xff]  ;;  %v413_v6 = vld [vmem:[#allocation2 + $0x8] sm:$0xff] }
  0x1c   : > { %678 = vmatprep.subr.bf16.mxu0 %v763_v5  ;;  %vm866_vm1 = vcmp.lt.s32.totalorder %v341_v16, %v343_v19  ;;  %vm870_vm2 = vcmp.lt.s32.totalorder %v342_v18, %v343_v19  ;;  %v412_v2 = vld [vmem:[#allocation2] sm:$0xff] }
  0x1d   : > { %v337_v8 = vstv %s336_s20  ;;  %v350_v24 = vsel %vm866_vm1, %v663_v20, 0.0  ;;  %v351_v25 = vsel %vm870_vm2, %v664_v21, 0.0 }
  0x1e   : > { %733 = vrcp.f32 %v337_v8  ;;  %v352_v26 = vadd.f32 %v351_v25, %v350_v24 }
  0x1f   : > { %679 = vmatpush3.bf16.msra.mxu0 %v727_v7 }
  0x20   : > { %680 = vmatprep.subr.bf16.mxu0 %v763_v5  ;;  %v353_v27 = vrot.slane %v352_v26, 4 }
  0x22   : > { %v354_v28 = vadd.f32 %v353_v27, %v352_v26 }
  0x23   : > { %681 = vmatpush3.bf16.msra.mxu0 %v728_v9 }
  0x24   : > { %682 = vmatprep.subr.bf16.mxu0 %v763_v5  ;;  %v355_v29 = vrot.slane %v354_v28, 2 }
  0x26   : > { %v356_v30 = vadd.f32 %v355_v29, %v354_v28 }
  0x27   : > { %683 = vmatpush3.bf16.msra.mxu0 %v729_v10 }
  0x28   : > { %684 = vmatprep.subr.bf16.mxu0 %v763_v5  ;;  %v357_v31 = vrot.slane %v356_v30, 1 }
  0x2a   : > { %v358_v32 = vadd.f32 %v357_v31, %v356_v30 }
  0x2b   : > { %v734_v12 = vpop.eup %733  ;;  %685 = vmatpush3.bf16.msra.mxu0 %v730_v11 }
  0x2c   : > { %694 = vpush %v734_v12  ;;  %686 = vmatprep.subr.bf16.mxu0 %v763_v5 }
  0x2f   : > { %687 = vmatpush3.bf16.msra.mxu0 %v731_v13 }
  0x30   : > { %688 = vmatprep.subr.bf16.mxu0 %v763_v5 }
  0x33   : > { %689 = vmatpush3.bf16.msra.mxu0 %v732_v14 }
  0x5d   : > { %s695_s25 = spop %694 }
  0x5e   : > { %v359_v33 = vstv %s695_s25 }
  0x5f   : > { %v360_v34 = vmul.f32 %v359_v33, %v358_v32 }
  0x61   : > { %v361_v35 = vsub.f32 %v663_v20, %v360_v34  ;;  %v362_v36 = vsub.f32 %v664_v21, %v360_v34 }
  0x63   : > { %v363_v37 = vsel %vm866_vm1, %v361_v35, 0.0  ;;  %v364_v38 = vsel %vm870_vm2, %v362_v36, 0.0 }
  0x64   : > { %v365_v39 = vmul.f32 %v363_v37, %v363_v37  ;;  %v366_v40 = vmul.f32 %v364_v38, %v364_v38 }
  0x66   : > { %v367_v41 = vadd.f32 %v366_v40, %v365_v39 }
  0x68   : > { %v368_v42 = vrot.slane %v367_v41, 4 }
  0x6a   : > { %v369_v43 = vadd.f32 %v368_v42, %v367_v41 }
  0x6c   : > { %v370_v44 = vrot.slane %v369_v43, 2 }
  0x6e   : > { %v371_v45 = vadd.f32 %v370_v44, %v369_v43 }
  0x70   : > { %v372_v46 = vrot.slane %v371_v45, 1 }
  0x72   : > { %v373_v47 = vadd.f32 %v372_v46, %v371_v45 }
  0x74   : > { %v374_v48 = vmul.f32 %v373_v47, %v359_v33 }
  0x76   : > { %v376_v49 = vadd.f32 1e-05, %v374_v48 }
  0x78   : > { %735 = vrsqrt.f32 %v376_v49 }
  0x85   : > { %v736_v52 = vpop.eup %735 }
  0x86   : > { %v378_v53 = vmul.f32 %v736_v52, %v375_v50 }
  0x88   : > { %v383_v54 = vrot.slane %v378_v53, %v382_v51 }
  0x8a   : > { %v385_v55 = vmul.f32 %v383_v54, %v363_v37  ;;  %v386_v56 = vmul.f32 %v383_v54, %v364_v38 }
  0x8c   : > { %v394_v58 = vadd.f32 %v645_v57, %v385_v55  ;;  %v395_v59 = vadd.f32 %v645_v57, %v386_v56 }
  0x8e   : > { %vm396_vm3 = vcmp.ge.f32.partialorder %v394_v58, 0.0  ;;  %vm397_vm4 = vcmp.ge.f32.partialorder %v395_v59, 0.0 }
  0x92   : > { %v406_v60 = vpop.permute.xlu0 %405 }
  0x93   : > { %v408_v61 = vmul.f32 %v406_v60, %v394_v58  ;;  %v409_v62 = vmul.f32 %v406_v60, %v395_v59 }
  0x95   : > { %v410_v63 = vsel %vm396_vm3, %v394_v58, %v408_v61  ;;  %v411_v0 = vsel %vm397_vm4, %v395_v59, %v409_v62 }
  0x96   : > { %v414_v1 = vpack.c.bf16 %v411_v0, %v410_v63 }
  0x98   : > { %691 = vmatmul.mubr.bf16.vlgmr.msra.gmra.mxu0 %v414_v1 }
 0x158   : > { %v513_v3 = vpop.f32.mrf.mxu0 }
 0x159   : > { %v520_v4 = vadd.f32 %v513_v3, %v412_v2 }
 0x15a   : > { %v692_v5 = vpop.f32.mrf.mxu0 }
 0x15b   : > { %522 = vst [vmem:[#allocation2] sm:$0xff] %v520_v4  ;;  %527 = sbr.rel (%p655_p7) target bundleno = 362 (0x16a), region = 52 }
 0x15c   : > { %v516_v7 = vpop.f32.mrf.mxu0 }
 0x15d   : > { %v521_v8 = vadd.f32 %v516_v7, %v413_v6 }
 0x15e   : > { %v693_v9 = vpop.f32.mrf.mxu0 }
 0x15f   : > { %523 = vst [vmem:[#allocation2 + $0x8] sm:$0xff] %v521_v8 }
 0x160   : > { %v656_v11 = vld [vmem:[%s917_s6] ss:$0 sm:$0xff] }
 0x162   : > { %v528_v10 = vld [vmem:[#allocation2] sm:$0xff] }
 0x163   : > { %v537_v13 = vadd.f32 %v656_v11, %v528_v10 }
 0x165   : > { %539 = vst [vmem:[%s918_s7] sm:$0xff] %v537_v13 }
 0x166   : > { %v529_v12 = vld [vmem:[#allocation2 + $0x8] sm:$0xff] }
 0x167   : > { %v538_v14 = vadd.f32 %v656_v11, %v529_v12 }
 0x169   : > { %540 = vst [vmem:[%s918_s7 + $0x8] sm:$0xff] %v538_v14 }
 0x16a PF: > { %s20_s30 = sadd.s32 1, %s759_s30   ;;  %s923_s28 = smov %s755_s29 }
 0x16b   : > { %p17_p8 = scmp.ge.s32.totalorder %s20_s30, 4   ;;  %s924_s29 = smov %s926_s0 }
 0x16d   :  { %19 = sbr.rel (!%p17_p8) target bundleno = 3 (0x3), region = 92 }

</bundles_post_ra>
